<compile_context>
chip_gen: v7x
topology: tpu7x:2x2x1
jax: 0.10.0
libtpu: 0.0.40
codegen_flags: <defaults>
</compile_context>

<pallas_src>
import math

import jax
import jax.numpy as jnp
from jax.experimental import pallas as pl
from jax.experimental.pallas import tpu as pltpu  # noqa: F401  (not needed at this size)

# ----------------------------- synthetic config ------------------------------
VOCAB = 128          # cfg.input_dim (n_vocab)
HIDDEN = 32          # cfg.hidden_dim
FF = 64              # cfg.feedforward_dim
NUM_HEADS = 4        # cfg.num_heads
HEAD_DIM = HIDDEN // NUM_HEADS
NUM_LAYERS = 2       # cfg.num_layers
MAX_LEN = 16         # cfg.max_len
NUM_CLASSES = 4      # cfg.num_classes
SEQ = 8
BATCH = 2
NUM_MASKED = 4
LN_EPS = 1e-12       # tfm.LayerNorm variance_epsilon

BS = BATCH * SEQ             # 16 rows of the activation slab
BM = BATCH * NUM_MASKED      # 8 masked-LM rows
LANES = 128

# ---- bf16 weight slab layout (row offsets; all multiples of 16 for bf16 tiling) ----
W_QKV_OFF = 0                                   # (H, 3H)   1/sqrt(dk) folded into Wq
W_O_OFF = HIDDEN                                # (HD, NH*H) head-repacked output proj
W_F1_OFF = HIDDEN + 16                          # (H, F)
W_F2_OFF = HIDDEN + 16 + HIDDEN                 # (F, H)
W_LAYER_STRIDE = HIDDEN + 16 + HIDDEN + FF      # 144
W_LM_OFF = NUM_LAYERS * W_LAYER_STRIDE          # 288  fc_lm (H, H)
W_CLS_OFF = W_LM_OFF + HIDDEN                   # 320  cls  (H, C) zero-padded to 128 lanes
W_EMBT_OFF = W_CLS_OFF + HIDDEN                 # 352  tied decoder tok_embed^T (H, V)
W_ROWS = W_EMBT_OFF + HIDDEN                    # 384

# ---- f32 vector slab layout (row offsets) ----
V_TOK_OFF = 0                                   # (V, H) token table (exact one-hot lookup)
V_POS_OFF = VOCAB                               # (BS, H) positional rows pre-tiled over batch
V_EXTRA_OFF = V_POS_OFF + BS                    # seg0, seg1-seg0, g_e, b_e
V_LBIAS_OFF = V_EXTRA_OFF + 8                   # per layer: b_qkv, b_o, g1, b1, b_f1, b_f2, g2, b2
V_HEAD_OFF = V_LBIAS_OFF + 8 * NUM_LAYERS       # b_lm, g_lm, beta_lm, b_dec, b_cls
V_ROWS = V_HEAD_OFF + 8                         # 176

# ---- merged i32 control buffer layout ----
CTRL_ROWS = BS + 8                              # rows [0:BS) per-token fields, row BS key codes
CTRL_COLS = 16                                  # col0 tok, col1 seg, col2 batch-id, col3 sel idx


# --------------------------- in-kernel math helpers ---------------------------
def _gelu(x):
    # tanh-form GELU (EUP tanh); deviation from exact erf GELU is far below tolerance.
    c = 0.7978845608028654  # sqrt(2/pi)
    return 0.5 * x * (1.0 + jnp.tanh(c * (x + 0.044715 * x * x * x)))


def _layernorm(x, g, b):
    u = jnp.mean(x, axis=-1, keepdims=True)
    v = jnp.mean((x - u) ** 2, axis=-1, keepdims=True)
    return g * ((x - u) * jax.lax.rsqrt(v + LN_EPS)) + b


# ------------------------------ fused kernel ----------------------------------
def fused_plus_tfm_kernel(ctrl_ref, w_ref, vec_ref, out_ref):
    f32, bf16 = jnp.float32, jnp.bfloat16
    B, S, H, NH, HD, V, F = BATCH, SEQ, HIDDEN, NUM_HEADS, HEAD_DIM, VOCAB, FF

    # ---------------- control fields (single merged i32 buffer) ----------------
    tok = ctrl_ref[0:BS, 0:1]                          # (BS,1) token ids
    seg = ctrl_ref[0:BS, 1:2].astype(f32)              # (BS,1) segment in {0,1}
    qcode = ctrl_ref[0:BS, 2:3]                        # (BS,1) batch id per query row
    selidx = ctrl_ref[0:BM + B, 3:4]                   # (BM+B,1) gather row indices (mlm + cls)
    kcode = ctrl_ref[BS:BS + 1, 0:BS]                  # (1,BS) key batch id, -1 where masked

    # ---- embedding: exact one-hot token lookup + pre-tiled pos + segment blend ----
    tok_oh = (tok == jax.lax.broadcasted_iota(jnp.int32, (BS, V), 1)).astype(f32)
    x = jnp.dot(tok_oh, vec_ref[V_TOK_OFF:V_TOK_OFF + V, 0:H], preferred_element_type=f32)
    x = x + vec_ref[V_POS_OFF:V_POS_OFF + BS, 0:H]
    seg0 = vec_ref[V_EXTRA_OFF + 0:V_EXTRA_OFF + 1, 0:H]
    segd = vec_ref[V_EXTRA_OFF + 1:V_EXTRA_OFF + 2, 0:H]        # seg1 - seg0
    x = x + seg0 + seg * segd
    x = _layernorm(x, vec_ref[V_EXTRA_OFF + 2:V_EXTRA_OFF + 3, 0:H],
                   vec_ref[V_EXTRA_OFF + 3:V_EXTRA_OFF + 4, 0:H])

    # ---- attention bias, computed ONCE: key mask + batch block-diag, no transposes ----
    # valid[q,k] = 1 iff key k is unmasked AND in the same batch as query q.
    bias = -10000.0 * (1.0 - (kcode == qcode).astype(f32))      # (BS, BS)

    # ------------------------------- encoder layers -------------------------------
    for l in range(NUM_LAYERS):
        wb = l * W_LAYER_STRIDE
        vb = V_LBIAS_OFF + 8 * l

        qkv = jnp.dot(x.astype(bf16), w_ref[wb + W_QKV_OFF:wb + W_QKV_OFF + H, 0:3 * H],
                      preferred_element_type=f32) + vec_ref[vb + 0:vb + 1, 0:3 * H]
        qkv_b = qkv.astype(bf16)                                 # (BS, 3H); scale folded in Wq/bq

        proj = None
        for h in range(NH):                                      # static loop, no stacks/concats
            q = qkv_b[:, h * HD:(h + 1) * HD]
            k = qkv_b[:, H + h * HD:H + (h + 1) * HD]
            v = qkv_b[:, 2 * H + h * HD:2 * H + (h + 1) * HD]
            s = jax.lax.dot_general(q, k, (((1,), (1,)), ((), ())),
                                    preferred_element_type=f32) + bias      # (BS, BS)
            e = jnp.exp(s - jnp.max(s, axis=-1, keepdims=True))
            p = e * pl.reciprocal(jnp.sum(e, axis=-1, keepdims=True), approx=True)
            c = jnp.dot(p.astype(bf16), v, preferred_element_type=f32)      # (BS, HD)
            # head-repacked output projection: lane slice [h*H, (h+1)*H) holds Wo rows of head h
            contrib = jnp.dot(c.astype(bf16),
                              w_ref[wb + W_O_OFF:wb + W_O_OFF + HD, h * H:(h + 1) * H],
                              preferred_element_type=f32)                    # (BS, H)
            proj = contrib if proj is None else proj + contrib
        proj = proj + vec_ref[vb + 1:vb + 2, 0:H]
        x = _layernorm(x + proj, vec_ref[vb + 2:vb + 3, 0:H], vec_ref[vb + 3:vb + 4, 0:H])

        ff = jnp.dot(x.astype(bf16), w_ref[wb + W_F1_OFF:wb + W_F1_OFF + H, 0:F],
                     preferred_element_type=f32) + vec_ref[vb + 4:vb + 5, 0:F]
        ff = _gelu(ff)
        ff = jnp.dot(ff.astype(bf16), w_ref[wb + W_F2_OFF:wb + W_F2_OFF + F, 0:H],
                     preferred_element_type=f32) + vec_ref[vb + 5:vb + 6, 0:H]
        x = _layernorm(x + ff, vec_ref[vb + 6:vb + 7, 0:H], vec_ref[vb + 7:vb + 8, 0:H])

    # ---- ONE one-hot selection matmul gathers the BM masked-LM rows and the B cls rows ----
    sel = (selidx == jax.lax.broadcasted_iota(jnp.int32, (BM + B, BS), 1)).astype(f32)
    hsel = jnp.dot(sel, x, preferred_element_type=f32)            # (BM+B, H)

    # LM head (rows [0:BM)): fc_lm -> gelu -> norm_lm -> tied decoder -> log_softmax
    t = jnp.dot(hsel[0:BM, :].astype(bf16), w_ref[W_LM_OFF:W_LM_OFF + H, 0:H],
                preferred_element_type=f32) + vec_ref[V_HEAD_OFF + 0:V_HEAD_OFF + 1, 0:H]
    t = _layernorm(_gelu(t), vec_ref[V_HEAD_OFF + 1:V_HEAD_OFF + 2, 0:H],
                   vec_ref[V_HEAD_OFF + 2:V_HEAD_OFF + 3, 0:H])
    logits = jnp.dot(t.astype(bf16), w_ref[W_EMBT_OFF:W_EMBT_OFF + H, :],    # (BM, V) lane-dense
                     preferred_element_type=f32) + vec_ref[V_HEAD_OFF + 3:V_HEAD_OFF + 4, :]
    z = logits - jnp.max(logits, axis=-1, keepdims=True)
    out_ref[0:BM, :] = z - jnp.log(jnp.sum(jnp.exp(z), axis=-1, keepdims=True))

    # cls head (rows [BM:BM+B)) on h[:, 0]; w_cls/b_cls zero-padded to 128 lanes -> dense store
    cls = jnp.dot(hsel[BM:BM + B, :].astype(bf16), w_ref[W_CLS_OFF:W_CLS_OFF + H, :],
                  preferred_element_type=f32) + vec_ref[V_HEAD_OFF + 4:V_HEAD_OFF + 5, :]
    out_ref[BM:BM + B, :] = cls


# --------------------------------- wrapper -------------------------------------
def plus_tfm_forward(tokens, segments, input_mask, masked_pos, packed):
    B, S = tokens.shape
    M = masked_pos.shape[1]
    bs, bm = B * S, B * M

    # trivial host-side index/control prep (merged into one i32 buffer -> one DMA stream)
    bid = jnp.repeat(jnp.arange(B, dtype=jnp.int32), S)                           # (BS,)
    kcode = jnp.where(input_mask.reshape(-1) > 0, bid, -1).astype(jnp.int32)       # key batch codes
    mpos_flat = (masked_pos.astype(jnp.int32)
                 + jnp.arange(B, dtype=jnp.int32)[:, None] * S).reshape(-1)        # (BM,)
    sel_idx = jnp.concatenate([mpos_flat, jnp.arange(B, dtype=jnp.int32) * S])     # (BM+B,)

    ctrl = jnp.zeros((CTRL_ROWS, CTRL_COLS), jnp.int32)
    ctrl = ctrl.at[0:bs, 0].set(tokens.reshape(-1).astype(jnp.int32))
    ctrl = ctrl.at[0:bs, 1].set(segments.reshape(-1).astype(jnp.int32))
    ctrl = ctrl.at[0:bs, 2].set(bid)
    ctrl = ctrl.at[0:bm + B, 3].set(sel_idx)
    ctrl = ctrl.at[bs, 0:bs].set(kcode)

    out = pl.pallas_call(
        fused_plus_tfm_kernel,
        out_shape=jax.ShapeDtypeStruct((bm + B, LANES), jnp.float32),
    )(ctrl, packed["w_bf16"], packed["vec_f32"])

    logits_lm = out[:bm, :VOCAB].reshape(B, M, VOCAB)
    logits_cls = out[bm:, :NUM_CLASSES]
    return logits_lm, logits_cls


# --------------------------- deterministic parameters ---------------------------
def init_params(key):
    keys = iter(jax.random.split(key, 64))

    def nrm(shape, scale=0.02):
        return jax.random.normal(next(keys), shape, jnp.float32) * scale

    L, H, F, V, C = NUM_LAYERS, HIDDEN, FF, VOCAB, NUM_CLASSES
    p = {}
    p["tok_embed"] = nrm((V, H))
    p["pos_embed"] = nrm((MAX_LEN, H))
    p["seg_embed"] = nrm((2, H))
    p["g_e"] = 1.0 + nrm((1, H), 0.01)
    p["b_e"] = nrm((1, H))
    p["wq"], p["bq"] = nrm((L, H, H)), nrm((L, 1, H))
    p["wk"], p["bk"] = nrm((L, H, H)), nrm((L, 1, H))
    p["wv"], p["bv"] = nrm((L, H, H)), nrm((L, 1, H))
    p["wo"], p["bo"] = nrm((L, H, H)), nrm((L, 1, H))
    p["g1"], p["b1"] = 1.0 + nrm((L, 1, H), 0.01), nrm((L, 1, H))
    p["wf1"], p["bf1"] = nrm((L, H, F)), nrm((L, 1, F))
    p["wf2"], p["bf2"] = nrm((L, F, H)), nrm((L, 1, H))
    p["g2"], p["b2"] = 1.0 + nrm((L, 1, H), 0.01), nrm((L, 1, H))
    p["w_lm"], p["b_lm"] = nrm((H, H)), nrm((1, H))
    p["g_lm"], p["beta_lm"] = 1.0 + nrm((1, H), 0.01), nrm((1, H))
    p["b_dec"] = jnp.zeros((1, V), jnp.float32)                 # torch.zeros(n_vocab)
    p["w_cls"], p["b_cls"] = nrm((H, C)), nrm((1, C))
    return p


def pack_params(p):
    """Pack everything into 2 lane-dense slabs: bf16 MXU weights + f32 bias/table rows."""
    L, H, F = NUM_LAYERS, HIDDEN, FF
    NH, HD = NUM_HEADS, HEAD_DIM
    scale = 1.0 / math.sqrt(HD)

    def put(buf, r, a):
        return buf.at[r:r + a.shape[0], 0:a.shape[1]].set(a)

    # bf16 slab: every matmul RHS, pre-cast host-side (no in-kernel weight casts)
    w = jnp.zeros((W_ROWS, LANES), jnp.float32)
    for l in range(L):
        base = l * W_LAYER_STRIDE
        w = put(w, base + W_QKV_OFF,
                jnp.concatenate([p["wq"][l] * scale, p["wk"][l], p["wv"][l]], axis=1))
        # output projection repacked per head: (HD, NH*H) so the kernel slices lanes, not sublanes
        wo_heads = jnp.concatenate(
            [p["wo"][l][h * HD:(h + 1) * HD, :] for h in range(NH)], axis=1)
        w = put(w, base + W_O_OFF, wo_heads)
        w = put(w, base + W_F1_OFF, p["wf1"][l])
        w = put(w, base + W_F2_OFF, p["wf2"][l])
    w = put(w, W_LM_OFF, p["w_lm"])
    w = put(w, W_CLS_OFF, p["w_cls"])                       # zero-padded to 128 lanes
    w = put(w, W_EMBT_OFF, p["tok_embed"].T)                # tied decoder, pre-transposed (H, V)

    # f32 slab: embedding tables + every bias / LayerNorm vector (VPU math stays f32)
    vec = jnp.zeros((V_ROWS, LANES), jnp.float32)
    vec = put(vec, V_TOK_OFF, p["tok_embed"])
    vec = put(vec, V_POS_OFF, jnp.tile(p["pos_embed"][:SEQ], (BATCH, 1)))   # pre-tiled over batch
    vec = put(vec, V_EXTRA_OFF + 0, p["seg_embed"][0:1])
    vec = put(vec, V_EXTRA_OFF + 1, p["seg_embed"][1:2] - p["seg_embed"][0:1])
    vec = put(vec, V_EXTRA_OFF + 2, p["g_e"])
    vec = put(vec, V_EXTRA_OFF + 3, p["b_e"])
    for l in range(L):
        vb = V_LBIAS_OFF + 8 * l
        vec = put(vec, vb + 0,
                  jnp.concatenate([p["bq"][l] * scale, p["bk"][l], p["bv"][l]], axis=1))
        vec = put(vec, vb + 1, p["bo"][l])
        vec = put(vec, vb + 2, p["g1"][l])
        vec = put(vec, vb + 3, p["b1"][l])
        vec = put(vec, vb + 4, p["bf1"][l])
        vec = put(vec, vb + 5, p["bf2"][l])
        vec = put(vec, vb + 6, p["g2"][l])
        vec = put(vec, vb + 7, p["b2"][l])
    vec = put(vec, V_HEAD_OFF + 0, p["b_lm"])
    vec = put(vec, V_HEAD_OFF + 1, p["g_lm"])
    vec = put(vec, V_HEAD_OFF + 2, p["beta_lm"])
    vec = put(vec, V_HEAD_OFF + 3, p["b_dec"])
    vec = put(vec, V_HEAD_OFF + 4, p["b_cls"])
    return {"w_bf16": w.astype(jnp.bfloat16), "vec_f32": vec}


# ------------------------------ pure-JAX reference ------------------------------
def reference_forward(tokens, segments, input_mask, masked_pos, p):
    from jax.scipy.special import erf as erf_exact
    gelu = lambda x: x * 0.5 * (1.0 + erf_exact(x / math.sqrt(2.0)))

    def ln(x, g, b):
        u = jnp.mean(x, -1, keepdims=True)
        s = jnp.mean((x - u) ** 2, -1, keepdims=True)
        return g * ((x - u) / jnp.sqrt(s + LN_EPS)) + b

    B, S = tokens.shape
    x = (p["tok_embed"][tokens] + p["pos_embed"][jnp.arange(S)][None]
         + p["seg_embed"][segments])
    x = ln(x, p["g_e"], p["b_e"])
    bias = -10000.0 * (1.0 - input_mask.astype(jnp.float32))[:, None, None, :]
    for l in range(NUM_LAYERS):
        q = x @ p["wq"][l] + p["bq"][l]
        k = x @ p["wk"][l] + p["bk"][l]
        v = x @ p["wv"][l] + p["bv"][l]
        split = lambda t: t.reshape(B, S, NUM_HEADS, HEAD_DIM).transpose(0, 2, 1, 3)
        qh, kh, vh = split(q), split(k), split(v)
        s = jnp.einsum("bhqd,bhkd->bhqk", qh, kh) / math.sqrt(HEAD_DIM) + bias
        attn = jax.nn.softmax(s, axis=-1)
        ctx = jnp.einsum("bhqk,bhkd->bhqd", attn, vh).transpose(0, 2, 1, 3).reshape(B, S, HIDDEN)
        x = ln(x + ctx @ p["wo"][l] + p["bo"][l], p["g1"][l], p["b1"][l])
        ff = gelu(x @ p["wf1"][l] + p["bf1"][l]) @ p["wf2"][l] + p["bf2"][l]
        x = ln(x + ff, p["g2"][l], p["b2"][l])
    h = x
    idx = jnp.broadcast_to(masked_pos[:, :, None], (B, masked_pos.shape[1], HIDDEN))
    hm = jnp.take_along_axis(h, idx, axis=1)
    t = ln(gelu(hm @ p["w_lm"] + p["b_lm"]), p["g_lm"], p["beta_lm"])
    logits_lm = jax.nn.log_softmax(t @ p["tok_embed"].T + p["b_dec"], axis=2)
    logits_cls = h[:, 0] @ p["w_cls"] + p["b_cls"]
    return logits_lm, logits_cls


# ----------------------------------- main ---------------------------------------
if __name__ == "__main__":
    # TODO(synk): load_weights (.pt checkpoint I/O) and the em() helper are out of scope
    # for this synthetic kernel; dropout layers are identity (eval mode).
    root = jax.random.PRNGKey(0)
    kp, kt, km = jax.random.split(root, 3)
    params = init_params(kp)
    packed = pack_params(params)

    tokens = jax.random.randint(kt, (BATCH, SEQ), 0, VOCAB, dtype=jnp.int32)
    segments = jnp.concatenate([jnp.zeros((BATCH, SEQ // 2), jnp.int32),
                                jnp.ones((BATCH, SEQ // 2), jnp.int32)], axis=1)
    lengths = jnp.array([SEQ, SEQ - 2], dtype=jnp.int32)
    input_mask = (jnp.arange(SEQ)[None, :] < lengths[:, None]).astype(jnp.int32)
    masked_pos = jax.random.randint(km, (BATCH, NUM_MASKED), 0, SEQ, dtype=jnp.int32)

    fwd = jax.jit(plus_tfm_forward)
    logits_lm, logits_cls = fwd(tokens, segments, input_mask, masked_pos, packed)
    jax.block_until_ready((logits_lm, logits_cls))

    ref_lm, ref_cls = reference_forward(tokens, segments, input_mask, masked_pos, params)
    err_lm = float(jnp.max(jnp.abs(logits_lm - ref_lm)))
    err_cls = float(jnp.max(jnp.abs(logits_cls - ref_cls)))
    # bf16 MXU operands (f32 accumulate) + approx-reciprocal softmax + tanh-GELU keep the
    # fused kernel within a few 1e-3 of the pure-f32 erf reference; assert with margin.
    assert err_lm < 2e-2 and err_cls < 2e-2, (err_lm, err_cls)

    print("KERNEL_OK")
</pallas_src>

<mosaic_0001>
module attributes {stable_mosaic.version = 11 : i64} {
  func.func @fused_plus_tfm_kernel(%arg0: memref<24x16xi32, #tpu.memory_space<vmem>>, %arg1: memref<384x128xbf16, #tpu.memory_space<vmem>>, %arg2: memref<176x128xf32, #tpu.memory_space<vmem>>, %arg3: memref<10x128xf32, #tpu.memory_space<vmem>>) attributes {dimension_semantics = [], scalar_prefetch = 0 : i64, scratch_operands = 0 : i64, tpu.core_type = #tpu.core_type<tc>} {
    %c0 = arith.constant 0 : index
    %c0_0 = arith.constant 0 : index
    %0 = vector.load %arg0[%c0, %c0_0] : memref<24x16xi32, #tpu.memory_space<vmem>>, vector<16x1xi32>
    %c0_1 = arith.constant 0 : index
    %c1 = arith.constant 1 : index
    %1 = vector.load %arg0[%c0_1, %c1] : memref<24x16xi32, #tpu.memory_space<vmem>>, vector<16x1xi32>
    %2 = arith.sitofp %1 : vector<16x1xi32> to vector<16x1xf32>
    %c0_2 = arith.constant 0 : index
    %c2 = arith.constant 2 : index
    %3 = vector.load %arg0[%c0_2, %c2] : memref<24x16xi32, #tpu.memory_space<vmem>>, vector<16x1xi32>
    %c0_3 = arith.constant 0 : index
    %c3 = arith.constant 3 : index
    %4 = vector.load %arg0[%c0_3, %c3] : memref<24x16xi32, #tpu.memory_space<vmem>>, vector<10x1xi32>
    %c16 = arith.constant 16 : index
    %c0_4 = arith.constant 0 : index
    %5 = vector.load %arg0[%c16, %c0_4] : memref<24x16xi32, #tpu.memory_space<vmem>>, vector<1x16xi32>
    %6 = tpu.iota {dimensions = array<i32: 1>} : vector<16x128xi32>
    %7 = vector.broadcast %0 : vector<16x1xi32> to vector<16x128xi32>
    %8 = arith.cmpi eq, %7, %6 : vector<16x128xi32>
    %9 = arith.extui %8 : vector<16x128xi1> to vector<16x128xi32>
    %10 = arith.sitofp %9 : vector<16x128xi32> to vector<16x128xf32>
    %c0_5 = arith.constant 0 : index
    %c0_6 = arith.constant 0 : index
    %11 = vector.load %arg2[%c0_5, %c0_6] : memref<176x128xf32, #tpu.memory_space<vmem>>, vector<128x32xf32>
    %cst = arith.constant dense<0.000000e+00> : vector<16x32xf32>
    %12 = tpu.matmul %10, %11, %cst {dimension_numbers = #tpu.dot_dimension_numbers<[1], [0], [0], [1], [0, 0, 1, 1], [], []>} : vector<16x128xf32>, vector<128x32xf32>, vector<16x32xf32> -> vector<16x32xf32>
    %c128 = arith.constant 128 : index
    %c0_7 = arith.constant 0 : index
    %13 = vector.load %arg2[%c128, %c0_7] : memref<176x128xf32, #tpu.memory_space<vmem>>, vector<16x32xf32>
    %14 = arith.addf %12, %13 : vector<16x32xf32>
    %c144 = arith.constant 144 : index
    %c0_8 = arith.constant 0 : index
    %15 = vector.load %arg2[%c144, %c0_8] : memref<176x128xf32, #tpu.memory_space<vmem>>, vector<1x32xf32>
    %c145 = arith.constant 145 : index
    %c0_9 = arith.constant 0 : index
    %16 = vector.load %arg2[%c145, %c0_9] : memref<176x128xf32, #tpu.memory_space<vmem>>, vector<1x32xf32>
    %17 = vector.broadcast %15 : vector<1x32xf32> to vector<16x32xf32>
    %18 = arith.addf %14, %17 : vector<16x32xf32>
    %19 = vector.broadcast %2 : vector<16x1xf32> to vector<16x32xf32>
    %20 = vector.broadcast %16 : vector<1x32xf32> to vector<16x32xf32>
    %21 = arith.mulf %19, %20 : vector<16x32xf32>
    %22 = arith.addf %18, %21 : vector<16x32xf32>
    %c146 = arith.constant 146 : index
    %c0_10 = arith.constant 0 : index
    %23 = vector.load %arg2[%c146, %c0_10] : memref<176x128xf32, #tpu.memory_space<vmem>>, vector<1x32xf32>
    %c147 = arith.constant 147 : index
    %c0_11 = arith.constant 0 : index
    %24 = vector.load %arg2[%c147, %c0_11] : memref<176x128xf32, #tpu.memory_space<vmem>>, vector<1x32xf32>
    %cst_12 = arith.constant dense<0.000000e+00> : vector<16xf32>
    %25 = vector.multi_reduction <add>, %22, %cst_12 [1] : vector<16x32xf32> to vector<16xf32>
    %26 = vector.shape_cast %25 : vector<16xf32> to vector<16x1xf32>
    %cst_13 = arith.constant 3.200000e+01 : f32
    %27 = vector.broadcast %cst_13 : f32 to vector<16x1xf32>
    %28 = arith.divf %26, %27 : vector<16x1xf32>
    %29 = vector.broadcast %28 : vector<16x1xf32> to vector<16x32xf32>
    %30 = arith.subf %22, %29 : vector<16x32xf32>
    %31 = arith.mulf %30, %30 : vector<16x32xf32>
    %cst_14 = arith.constant dense<0.000000e+00> : vector<16xf32>
    %32 = vector.multi_reduction <add>, %31, %cst_14 [1] : vector<16x32xf32> to vector<16xf32>
    %33 = vector.shape_cast %32 : vector<16xf32> to vector<16x1xf32>
    %cst_15 = arith.constant 3.200000e+01 : f32
    %34 = vector.broadcast %cst_15 : f32 to vector<16x1xf32>
    %35 = arith.divf %33, %34 : vector<16x1xf32>
    %36 = vector.broadcast %28 : vector<16x1xf32> to vector<16x32xf32>
    %37 = arith.subf %22, %36 : vector<16x32xf32>
    %cst_16 = arith.constant 9.99999996E-13 : f32
    %38 = vector.broadcast %cst_16 : f32 to vector<16x1xf32>
    %39 = arith.addf %35, %38 : vector<16x1xf32>
    %40 = math.rsqrt %39 : vector<16x1xf32>
    %41 = vector.broadcast %40 : vector<16x1xf32> to vector<16x32xf32>
    %42 = arith.mulf %37, %41 : vector<16x32xf32>
    %43 = vector.broadcast %23 : vector<1x32xf32> to vector<16x32xf32>
    %44 = arith.mulf %43, %42 : vector<16x32xf32>
    %45 = vector.broadcast %24 : vector<1x32xf32> to vector<16x32xf32>
    %46 = arith.addf %44, %45 : vector<16x32xf32>
    %47 = vector.broadcast %5 : vector<1x16xi32> to vector<16x16xi32>
    %48 = vector.broadcast %3 : vector<16x1xi32> to vector<16x16xi32>
    %49 = arith.cmpi eq, %47, %48 : vector<16x16xi32>
    %50 = arith.extui %49 : vector<16x16xi1> to vector<16x16xi32>
    %51 = arith.sitofp %50 : vector<16x16xi32> to vector<16x16xf32>
    %cst_17 = arith.constant 1.000000e+00 : f32
    %52 = vector.broadcast %cst_17 : f32 to vector<16x16xf32>
    %53 = arith.subf %52, %51 : vector<16x16xf32>
    %cst_18 = arith.constant -1.000000e+04 : f32
    %54 = vector.broadcast %cst_18 : f32 to vector<16x16xf32>
    %55 = arith.mulf %54, %53 : vector<16x16xf32>
    %56 = arith.truncf %46 : vector<16x32xf32> to vector<16x32xbf16>
    %c0_19 = arith.constant 0 : index
    %c0_20 = arith.constant 0 : index
    %57 = vector.load %arg1[%c0_19, %c0_20] : memref<384x128xbf16, #tpu.memory_space<vmem>>, vector<32x96xbf16>
    %cst_21 = arith.constant dense<0.000000e+00> : vector<16x96xf32>
    %58 = tpu.matmul %56, %57, %cst_21 {dimension_numbers = #tpu.dot_dimension_numbers<[1], [0], [0], [1], [0, 0, 1, 1], [], []>} : vector<16x32xbf16>, vector<32x96xbf16>, vector<16x96xf32> -> vector<16x96xf32>
    %c152 = arith.constant 152 : index
    %c0_22 = arith.constant 0 : index
    %59 = vector.load %arg2[%c152, %c0_22] : memref<176x128xf32, #tpu.memory_space<vmem>>, vector<1x96xf32>
    %60 = vector.broadcast %59 : vector<1x96xf32> to vector<16x96xf32>
    %61 = arith.addf %58, %60 : vector<16x96xf32>
    %62 = arith.truncf %61 : vector<16x96xf32> to vector<16x96xbf16>
    %63 = vector.extract_strided_slice %62 {offsets = [0, 0], sizes = [16, 8], strides = [1, 1]} : vector<16x96xbf16> to vector<16x8xbf16>
    %64 = vector.extract_strided_slice %62 {offsets = [0, 32], sizes = [16, 8], strides = [1, 1]} : vector<16x96xbf16> to vector<16x8xbf16>
    %65 = vector.extract_strided_slice %62 {offsets = [0, 64], sizes = [16, 8], strides = [1, 1]} : vector<16x96xbf16> to vector<16x8xbf16>
    %cst_23 = arith.constant dense<0.000000e+00> : vector<16x16xf32>
    %66 = tpu.matmul %63, %64, %cst_23 {dimension_numbers = #tpu.dot_dimension_numbers<[1], [1], [0], [0], [0, 0, 1, 0], [], []>} : vector<16x8xbf16>, vector<16x8xbf16>, vector<16x16xf32> -> vector<16x16xf32>
    %67 = arith.addf %66, %55 : vector<16x16xf32>
    %cst_24 = arith.constant dense<0xFF800000> : vector<16xf32>
    %68 = vector.multi_reduction <maximumf>, %67, %cst_24 [1] : vector<16x16xf32> to vector<16xf32>
    %69 = vector.shape_cast %68 : vector<16xf32> to vector<16x1xf32>
    %70 = vector.broadcast %69 : vector<16x1xf32> to vector<16x16xf32>
    %71 = arith.subf %67, %70 : vector<16x16xf32>
    %72 = math.exp %71 : vector<16x16xf32>
    %cst_25 = arith.constant dense<0.000000e+00> : vector<16xf32>
    %73 = vector.multi_reduction <add>, %72, %cst_25 [1] : vector<16x16xf32> to vector<16xf32>
    %74 = vector.shape_cast %73 : vector<16xf32> to vector<16x1xf32>
    %75 = tpu.reciprocal %74 {approx = true} : vector<16x1xf32> -> vector<16x1xf32>
    %76 = vector.broadcast %75 : vector<16x1xf32> to vector<16x16xf32>
    %77 = arith.mulf %72, %76 : vector<16x16xf32>
    %78 = arith.truncf %77 : vector<16x16xf32> to vector<16x16xbf16>
    %cst_26 = arith.constant dense<0.000000e+00> : vector<16x8xf32>
    %79 = tpu.matmul %78, %65, %cst_26 {dimension_numbers = #tpu.dot_dimension_numbers<[1], [0], [0], [1], [0, 0, 1, 1], [], []>} : vector<16x16xbf16>, vector<16x8xbf16>, vector<16x8xf32> -> vector<16x8xf32>
    %80 = arith.truncf %79 : vector<16x8xf32> to vector<16x8xbf16>
    %c32 = arith.constant 32 : index
    %c0_27 = arith.constant 0 : index
    %81 = vector.load %arg1[%c32, %c0_27] : memref<384x128xbf16, #tpu.memory_space<vmem>>, vector<8x32xbf16>
    %cst_28 = arith.constant dense<0.000000e+00> : vector<16x32xf32>
    %82 = tpu.matmul %80, %81, %cst_28 {dimension_numbers = #tpu.dot_dimension_numbers<[1], [0], [0], [1], [0, 0, 1, 1], [], []>} : vector<16x8xbf16>, vector<8x32xbf16>, vector<16x32xf32> -> vector<16x32xf32>
    %83 = vector.extract_strided_slice %62 {offsets = [0, 8], sizes = [16, 8], strides = [1, 1]} : vector<16x96xbf16> to vector<16x8xbf16>
    %84 = vector.extract_strided_slice %62 {offsets = [0, 40], sizes = [16, 8], strides = [1, 1]} : vector<16x96xbf16> to vector<16x8xbf16>
    %85 = vector.extract_strided_slice %62 {offsets = [0, 72], sizes = [16, 8], strides = [1, 1]} : vector<16x96xbf16> to vector<16x8xbf16>
    %cst_29 = arith.constant dense<0.000000e+00> : vector<16x16xf32>
    %86 = tpu.matmul %83, %84, %cst_29 {dimension_numbers = #tpu.dot_dimension_numbers<[1], [1], [0], [0], [0, 0, 1, 0], [], []>} : vector<16x8xbf16>, vector<16x8xbf16>, vector<16x16xf32> -> vector<16x16xf32>
    %87 = arith.addf %86, %55 : vector<16x16xf32>
    %cst_30 = arith.constant dense<0xFF800000> : vector<16xf32>
    %88 = vector.multi_reduction <maximumf>, %87, %cst_30 [1] : vector<16x16xf32> to vector<16xf32>
    %89 = vector.shape_cast %88 : vector<16xf32> to vector<16x1xf32>
    %90 = vector.broadcast %89 : vector<16x1xf32> to vector<16x16xf32>
    %91 = arith.subf %87, %90 : vector<16x16xf32>
    %92 = math.exp %91 : vector<16x16xf32>
    %cst_31 = arith.constant dense<0.000000e+00> : vector<16xf32>
    %93 = vector.multi_reduction <add>, %92, %cst_31 [1] : vector<16x16xf32> to vector<16xf32>
    %94 = vector.shape_cast %93 : vector<16xf32> to vector<16x1xf32>
    %95 = tpu.reciprocal %94 {approx = true} : vector<16x1xf32> -> vector<16x1xf32>
    %96 = vector.broadcast %95 : vector<16x1xf32> to vector<16x16xf32>
    %97 = arith.mulf %92, %96 : vector<16x16xf32>
    %98 = arith.truncf %97 : vector<16x16xf32> to vector<16x16xbf16>
    %cst_32 = arith.constant dense<0.000000e+00> : vector<16x8xf32>
    %99 = tpu.matmul %98, %85, %cst_32 {dimension_numbers = #tpu.dot_dimension_numbers<[1], [0], [0], [1], [0, 0, 1, 1], [], []>} : vector<16x16xbf16>, vector<16x8xbf16>, vector<16x8xf32> -> vector<16x8xf32>
    %100 = arith.truncf %99 : vector<16x8xf32> to vector<16x8xbf16>
    %c32_33 = arith.constant 32 : index
    %c32_34 = arith.constant 32 : index
    %101 = vector.load %arg1[%c32_33, %c32_34] : memref<384x128xbf16, #tpu.memory_space<vmem>>, vector<8x32xbf16>
    %cst_35 = arith.constant dense<0.000000e+00> : vector<16x32xf32>
    %102 = tpu.matmul %100, %101, %cst_35 {dimension_numbers = #tpu.dot_dimension_numbers<[1], [0], [0], [1], [0, 0, 1, 1], [], []>} : vector<16x8xbf16>, vector<8x32xbf16>, vector<16x32xf32> -> vector<16x32xf32>
    %103 = arith.addf %82, %102 : vector<16x32xf32>
    %104 = vector.extract_strided_slice %62 {offsets = [0, 16], sizes = [16, 8], strides = [1, 1]} : vector<16x96xbf16> to vector<16x8xbf16>
    %105 = vector.extract_strided_slice %62 {offsets = [0, 48], sizes = [16, 8], strides = [1, 1]} : vector<16x96xbf16> to vector<16x8xbf16>
    %106 = vector.extract_strided_slice %62 {offsets = [0, 80], sizes = [16, 8], strides = [1, 1]} : vector<16x96xbf16> to vector<16x8xbf16>
    %cst_36 = arith.constant dense<0.000000e+00> : vector<16x16xf32>
    %107 = tpu.matmul %104, %105, %cst_36 {dimension_numbers = #tpu.dot_dimension_numbers<[1], [1], [0], [0], [0, 0, 1, 0], [], []>} : vector<16x8xbf16>, vector<16x8xbf16>, vector<16x16xf32> -> vector<16x16xf32>
    %108 = arith.addf %107, %55 : vector<16x16xf32>
    %cst_37 = arith.constant dense<0xFF800000> : vector<16xf32>
    %109 = vector.multi_reduction <maximumf>, %108, %cst_37 [1] : vector<16x16xf32> to vector<16xf32>
    %110 = vector.shape_cast %109 : vector<16xf32> to vector<16x1xf32>
    %111 = vector.broadcast %110 : vector<16x1xf32> to vector<16x16xf32>
    %112 = arith.subf %108, %111 : vector<16x16xf32>
    %113 = math.exp %112 : vector<16x16xf32>
    %cst_38 = arith.constant dense<0.000000e+00> : vector<16xf32>
    %114 = vector.multi_reduction <add>, %113, %cst_38 [1] : vector<16x16xf32> to vector<16xf32>
    %115 = vector.shape_cast %114 : vector<16xf32> to vector<16x1xf32>
    %116 = tpu.reciprocal %115 {approx = true} : vector<16x1xf32> -> vector<16x1xf32>
    %117 = vector.broadcast %116 : vector<16x1xf32> to vector<16x16xf32>
    %118 = arith.mulf %113, %117 : vector<16x16xf32>
    %119 = arith.truncf %118 : vector<16x16xf32> to vector<16x16xbf16>
    %cst_39 = arith.constant dense<0.000000e+00> : vector<16x8xf32>
    %120 = tpu.matmul %119, %106, %cst_39 {dimension_numbers = #tpu.dot_dimension_numbers<[1], [0], [0], [1], [0, 0, 1, 1], [], []>} : vector<16x16xbf16>, vector<16x8xbf16>, vector<16x8xf32> -> vector<16x8xf32>
    %121 = arith.truncf %120 : vector<16x8xf32> to vector<16x8xbf16>
    %c32_40 = arith.constant 32 : index
    %c64 = arith.constant 64 : index
    %122 = vector.load %arg1[%c32_40, %c64] : memref<384x128xbf16, #tpu.memory_space<vmem>>, vector<8x32xbf16>
    %cst_41 = arith.constant dense<0.000000e+00> : vector<16x32xf32>
    %123 = tpu.matmul %121, %122, %cst_41 {dimension_numbers = #tpu.dot_dimension_numbers<[1], [0], [0], [1], [0, 0, 1, 1], [], []>} : vector<16x8xbf16>, vector<8x32xbf16>, vector<16x32xf32> -> vector<16x32xf32>
    %124 = arith.addf %103, %123 : vector<16x32xf32>
    %125 = vector.extract_strided_slice %62 {offsets = [0, 24], sizes = [16, 8], strides = [1, 1]} : vector<16x96xbf16> to vector<16x8xbf16>
    %126 = vector.extract_strided_slice %62 {offsets = [0, 56], sizes = [16, 8], strides = [1, 1]} : vector<16x96xbf16> to vector<16x8xbf16>
    %127 = vector.extract_strided_slice %62 {offsets = [0, 88], sizes = [16, 8], strides = [1, 1]} : vector<16x96xbf16> to vector<16x8xbf16>
    %cst_42 = arith.constant dense<0.000000e+00> : vector<16x16xf32>
    %128 = tpu.matmul %125, %126, %cst_42 {dimension_numbers = #tpu.dot_dimension_numbers<[1], [1], [0], [0], [0, 0, 1, 0], [], []>} : vector<16x8xbf16>, vector<16x8xbf16>, vector<16x16xf32> -> vector<16x16xf32>
    %129 = arith.addf %128, %55 : vector<16x16xf32>
    %cst_43 = arith.constant dense<0xFF800000> : vector<16xf32>
    %130 = vector.multi_reduction <maximumf>, %129, %cst_43 [1] : vector<16x16xf32> to vector<16xf32>
    %131 = vector.shape_cast %130 : vector<16xf32> to vector<16x1xf32>
    %132 = vector.broadcast %131 : vector<16x1xf32> to vector<16x16xf32>
    %133 = arith.subf %129, %132 : vector<16x16xf32>
    %134 = math.exp %133 : vector<16x16xf32>
    %cst_44 = arith.constant dense<0.000000e+00> : vector<16xf32>
    %135 = vector.multi_reduction <add>, %134, %cst_44 [1] : vector<16x16xf32> to vector<16xf32>
    %136 = vector.shape_cast %135 : vector<16xf32> to vector<16x1xf32>
    %137 = tpu.reciprocal %136 {approx = true} : vector<16x1xf32> -> vector<16x1xf32>
    %138 = vector.broadcast %137 : vector<16x1xf32> to vector<16x16xf32>
    %139 = arith.mulf %134, %138 : vector<16x16xf32>
    %140 = arith.truncf %139 : vector<16x16xf32> to vector<16x16xbf16>
    %cst_45 = arith.constant dense<0.000000e+00> : vector<16x8xf32>
    %141 = tpu.matmul %140, %127, %cst_45 {dimension_numbers = #tpu.dot_dimension_numbers<[1], [0], [0], [1], [0, 0, 1, 1], [], []>} : vector<16x16xbf16>, vector<16x8xbf16>, vector<16x8xf32> -> vector<16x8xf32>
    %142 = arith.truncf %141 : vector<16x8xf32> to vector<16x8xbf16>
    %c32_46 = arith.constant 32 : index
    %c96 = arith.constant 96 : index
    %143 = vector.load %arg1[%c32_46, %c96] : memref<384x128xbf16, #tpu.memory_space<vmem>>, vector<8x32xbf16>
    %cst_47 = arith.constant dense<0.000000e+00> : vector<16x32xf32>
    %144 = tpu.matmul %142, %143, %cst_47 {dimension_numbers = #tpu.dot_dimension_numbers<[1], [0], [0], [1], [0, 0, 1, 1], [], []>} : vector<16x8xbf16>, vector<8x32xbf16>, vector<16x32xf32> -> vector<16x32xf32>
    %145 = arith.addf %124, %144 : vector<16x32xf32>
    %c153 = arith.constant 153 : index
    %c0_48 = arith.constant 0 : index
    %146 = vector.load %arg2[%c153, %c0_48] : memref<176x128xf32, #tpu.memory_space<vmem>>, vector<1x32xf32>
    %147 = vector.broadcast %146 : vector<1x32xf32> to vector<16x32xf32>
    %148 = arith.addf %145, %147 : vector<16x32xf32>
    %149 = arith.addf %46, %148 : vector<16x32xf32>
    %c154 = arith.constant 154 : index
    %c0_49 = arith.constant 0 : index
    %150 = vector.load %arg2[%c154, %c0_49] : memref<176x128xf32, #tpu.memory_space<vmem>>, vector<1x32xf32>
    %c155 = arith.constant 155 : index
    %c0_50 = arith.constant 0 : index
    %151 = vector.load %arg2[%c155, %c0_50] : memref<176x128xf32, #tpu.memory_space<vmem>>, vector<1x32xf32>
    %cst_51 = arith.constant dense<0.000000e+00> : vector<16xf32>
    %152 = vector.multi_reduction <add>, %149, %cst_51 [1] : vector<16x32xf32> to vector<16xf32>
    %153 = vector.shape_cast %152 : vector<16xf32> to vector<16x1xf32>
    %cst_52 = arith.constant 3.200000e+01 : f32
    %154 = vector.broadcast %cst_52 : f32 to vector<16x1xf32>
    %155 = arith.divf %153, %154 : vector<16x1xf32>
    %156 = vector.broadcast %155 : vector<16x1xf32> to vector<16x32xf32>
    %157 = arith.subf %149, %156 : vector<16x32xf32>
    %158 = arith.mulf %157, %157 : vector<16x32xf32>
    %cst_53 = arith.constant dense<0.000000e+00> : vector<16xf32>
    %159 = vector.multi_reduction <add>, %158, %cst_53 [1] : vector<16x32xf32> to vector<16xf32>
    %160 = vector.shape_cast %159 : vector<16xf32> to vector<16x1xf32>
    %cst_54 = arith.constant 3.200000e+01 : f32
    %161 = vector.broadcast %cst_54 : f32 to vector<16x1xf32>
    %162 = arith.divf %160, %161 : vector<16x1xf32>
    %163 = vector.broadcast %155 : vector<16x1xf32> to vector<16x32xf32>
    %164 = arith.subf %149, %163 : vector<16x32xf32>
    %cst_55 = arith.constant 9.99999996E-13 : f32
    %165 = vector.broadcast %cst_55 : f32 to vector<16x1xf32>
    %166 = arith.addf %162, %165 : vector<16x1xf32>
    %167 = math.rsqrt %166 : vector<16x1xf32>
    %168 = vector.broadcast %167 : vector<16x1xf32> to vector<16x32xf32>
    %169 = arith.mulf %164, %168 : vector<16x32xf32>
    %170 = vector.broadcast %150 : vector<1x32xf32> to vector<16x32xf32>
    %171 = arith.mulf %170, %169 : vector<16x32xf32>
    %172 = vector.broadcast %151 : vector<1x32xf32> to vector<16x32xf32>
    %173 = arith.addf %171, %172 : vector<16x32xf32>
    %174 = arith.truncf %173 : vector<16x32xf32> to vector<16x32xbf16>
    %c48 = arith.constant 48 : index
    %c0_56 = arith.constant 0 : index
    %175 = vector.load %arg1[%c48, %c0_56] : memref<384x128xbf16, #tpu.memory_space<vmem>>, vector<32x64xbf16>
    %cst_57 = arith.constant dense<0.000000e+00> : vector<16x64xf32>
    %176 = tpu.matmul %174, %175, %cst_57 {dimension_numbers = #tpu.dot_dimension_numbers<[1], [0], [0], [1], [0, 0, 1, 1], [], []>} : vector<16x32xbf16>, vector<32x64xbf16>, vector<16x64xf32> -> vector<16x64xf32>
    %c156 = arith.constant 156 : index
    %c0_58 = arith.constant 0 : index
    %177 = vector.load %arg2[%c156, %c0_58] : memref<176x128xf32, #tpu.memory_space<vmem>>, vector<1x64xf32>
    %178 = vector.broadcast %177 : vector<1x64xf32> to vector<16x64xf32>
    %179 = arith.addf %176, %178 : vector<16x64xf32>
    %cst_59 = arith.constant 5.000000e-01 : f32
    %180 = vector.broadcast %cst_59 : f32 to vector<16x64xf32>
    %181 = arith.mulf %180, %179 : vector<16x64xf32>
    %cst_60 = arith.constant 4.471500e-02 : f32
    %182 = vector.broadcast %cst_60 : f32 to vector<16x64xf32>
    %183 = arith.mulf %182, %179 : vector<16x64xf32>
    %184 = arith.mulf %183, %179 : vector<16x64xf32>
    %185 = arith.mulf %184, %179 : vector<16x64xf32>
    %186 = arith.addf %179, %185 : vector<16x64xf32>
    %cst_61 = arith.constant 0.797884583 : f32
    %187 = vector.broadcast %cst_61 : f32 to vector<16x64xf32>
    %188 = arith.mulf %187, %186 : vector<16x64xf32>
    %189 = math.tanh %188 : vector<16x64xf32>
    %cst_62 = arith.constant 1.000000e+00 : f32
    %190 = vector.broadcast %cst_62 : f32 to vector<16x64xf32>
    %191 = arith.addf %190, %189 : vector<16x64xf32>
    %192 = arith.mulf %181, %191 : vector<16x64xf32>
    %193 = arith.truncf %192 : vector<16x64xf32> to vector<16x64xbf16>
    %c80 = arith.constant 80 : index
    %c0_63 = arith.constant 0 : index
    %194 = vector.load %arg1[%c80, %c0_63] : memref<384x128xbf16, #tpu.memory_space<vmem>>, vector<64x32xbf16>
    %cst_64 = arith.constant dense<0.000000e+00> : vector<16x32xf32>
    %195 = tpu.matmul %193, %194, %cst_64 {dimension_numbers = #tpu.dot_dimension_numbers<[1], [0], [0], [1], [0, 0, 1, 1], [], []>} : vector<16x64xbf16>, vector<64x32xbf16>, vector<16x32xf32> -> vector<16x32xf32>
    %c157 = arith.constant 157 : index
    %c0_65 = arith.constant 0 : index
    %196 = vector.load %arg2[%c157, %c0_65] : memref<176x128xf32, #tpu.memory_space<vmem>>, vector<1x32xf32>
    %197 = vector.broadcast %196 : vector<1x32xf32> to vector<16x32xf32>
    %198 = arith.addf %195, %197 : vector<16x32xf32>
    %199 = arith.addf %173, %198 : vector<16x32xf32>
    %c158 = arith.constant 158 : index
    %c0_66 = arith.constant 0 : index
    %200 = vector.load %arg2[%c158, %c0_66] : memref<176x128xf32, #tpu.memory_space<vmem>>, vector<1x32xf32>
    %c159 = arith.constant 159 : index
    %c0_67 = arith.constant 0 : index
    %201 = vector.load %arg2[%c159, %c0_67] : memref<176x128xf32, #tpu.memory_space<vmem>>, vector<1x32xf32>
    %cst_68 = arith.constant dense<0.000000e+00> : vector<16xf32>
    %202 = vector.multi_reduction <add>, %199, %cst_68 [1] : vector<16x32xf32> to vector<16xf32>
    %203 = vector.shape_cast %202 : vector<16xf32> to vector<16x1xf32>
    %cst_69 = arith.constant 3.200000e+01 : f32
    %204 = vector.broadcast %cst_69 : f32 to vector<16x1xf32>
    %205 = arith.divf %203, %204 : vector<16x1xf32>
    %206 = vector.broadcast %205 : vector<16x1xf32> to vector<16x32xf32>
    %207 = arith.subf %199, %206 : vector<16x32xf32>
    %208 = arith.mulf %207, %207 : vector<16x32xf32>
    %cst_70 = arith.constant dense<0.000000e+00> : vector<16xf32>
    %209 = vector.multi_reduction <add>, %208, %cst_70 [1] : vector<16x32xf32> to vector<16xf32>
    %210 = vector.shape_cast %209 : vector<16xf32> to vector<16x1xf32>
    %cst_71 = arith.constant 3.200000e+01 : f32
    %211 = vector.broadcast %cst_71 : f32 to vector<16x1xf32>
    %212 = arith.divf %210, %211 : vector<16x1xf32>
    %213 = vector.broadcast %205 : vector<16x1xf32> to vector<16x32xf32>
    %214 = arith.subf %199, %213 : vector<16x32xf32>
    %cst_72 = arith.constant 9.99999996E-13 : f32
    %215 = vector.broadcast %cst_72 : f32 to vector<16x1xf32>
    %216 = arith.addf %212, %215 : vector<16x1xf32>
    %217 = math.rsqrt %216 : vector<16x1xf32>
    %218 = vector.broadcast %217 : vector<16x1xf32> to vector<16x32xf32>
    %219 = arith.mulf %214, %218 : vector<16x32xf32>
    %220 = vector.broadcast %200 : vector<1x32xf32> to vector<16x32xf32>
    %221 = arith.mulf %220, %219 : vector<16x32xf32>
    %222 = vector.broadcast %201 : vector<1x32xf32> to vector<16x32xf32>
    %223 = arith.addf %221, %222 : vector<16x32xf32>
    %224 = arith.truncf %223 : vector<16x32xf32> to vector<16x32xbf16>
    %c144_73 = arith.constant 144 : index
    %c0_74 = arith.constant 0 : index
    %225 = vector.load %arg1[%c144_73, %c0_74] : memref<384x128xbf16, #tpu.memory_space<vmem>>, vector<32x96xbf16>
    %cst_75 = arith.constant dense<0.000000e+00> : vector<16x96xf32>
    %226 = tpu.matmul %224, %225, %cst_75 {dimension_numbers = #tpu.dot_dimension_numbers<[1], [0], [0], [1], [0, 0, 1, 1], [], []>} : vector<16x32xbf16>, vector<32x96xbf16>, vector<16x96xf32> -> vector<16x96xf32>
    %c160 = arith.constant 160 : index
    %c0_76 = arith.constant 0 : index
    %227 = vector.load %arg2[%c160, %c0_76] : memref<176x128xf32, #tpu.memory_space<vmem>>, vector<1x96xf32>
    %228 = vector.broadcast %227 : vector<1x96xf32> to vector<16x96xf32>
    %229 = arith.addf %226, %228 : vector<16x96xf32>
    %230 = arith.truncf %229 : vector<16x96xf32> to vector<16x96xbf16>
    %231 = vector.extract_strided_slice %230 {offsets = [0, 0], sizes = [16, 8], strides = [1, 1]} : vector<16x96xbf16> to vector<16x8xbf16>
    %232 = vector.extract_strided_slice %230 {offsets = [0, 32], sizes = [16, 8], strides = [1, 1]} : vector<16x96xbf16> to vector<16x8xbf16>
    %233 = vector.extract_strided_slice %230 {offsets = [0, 64], sizes = [16, 8], strides = [1, 1]} : vector<16x96xbf16> to vector<16x8xbf16>
    %cst_77 = arith.constant dense<0.000000e+00> : vector<16x16xf32>
    %234 = tpu.matmul %231, %232, %cst_77 {dimension_numbers = #tpu.dot_dimension_numbers<[1], [1], [0], [0], [0, 0, 1, 0], [], []>} : vector<16x8xbf16>, vector<16x8xbf16>, vector<16x16xf32> -> vector<16x16xf32>
    %235 = arith.addf %234, %55 : vector<16x16xf32>
    %cst_78 = arith.constant dense<0xFF800000> : vector<16xf32>
    %236 = vector.multi_reduction <maximumf>, %235, %cst_78 [1] : vector<16x16xf32> to vector<16xf32>
    %237 = vector.shape_cast %236 : vector<16xf32> to vector<16x1xf32>
    %238 = vector.broadcast %237 : vector<16x1xf32> to vector<16x16xf32>
    %239 = arith.subf %235, %238 : vector<16x16xf32>
    %240 = math.exp %239 : vector<16x16xf32>
    %cst_79 = arith.constant dense<0.000000e+00> : vector<16xf32>
    %241 = vector.multi_reduction <add>, %240, %cst_79 [1] : vector<16x16xf32> to vector<16xf32>
    %242 = vector.shape_cast %241 : vector<16xf32> to vector<16x1xf32>
    %243 = tpu.reciprocal %242 {approx = true} : vector<16x1xf32> -> vector<16x1xf32>
    %244 = vector.broadcast %243 : vector<16x1xf32> to vector<16x16xf32>
    %245 = arith.mulf %240, %244 : vector<16x16xf32>
    %246 = arith.truncf %245 : vector<16x16xf32> to vector<16x16xbf16>
    %cst_80 = arith.constant dense<0.000000e+00> : vector<16x8xf32>
    %247 = tpu.matmul %246, %233, %cst_80 {dimension_numbers = #tpu.dot_dimension_numbers<[1], [0], [0], [1], [0, 0, 1, 1], [], []>} : vector<16x16xbf16>, vector<16x8xbf16>, vector<16x8xf32> -> vector<16x8xf32>
    %248 = arith.truncf %247 : vector<16x8xf32> to vector<16x8xbf16>
    %c176 = arith.constant 176 : index
    %c0_81 = arith.constant 0 : index
    %249 = vector.load %arg1[%c176, %c0_81] : memref<384x128xbf16, #tpu.memory_space<vmem>>, vector<8x32xbf16>
    %cst_82 = arith.constant dense<0.000000e+00> : vector<16x32xf32>
    %250 = tpu.matmul %248, %249, %cst_82 {dimension_numbers = #tpu.dot_dimension_numbers<[1], [0], [0], [1], [0, 0, 1, 1], [], []>} : vector<16x8xbf16>, vector<8x32xbf16>, vector<16x32xf32> -> vector<16x32xf32>
    %251 = vector.extract_strided_slice %230 {offsets = [0, 8], sizes = [16, 8], strides = [1, 1]} : vector<16x96xbf16> to vector<16x8xbf16>
    %252 = vector.extract_strided_slice %230 {offsets = [0, 40], sizes = [16, 8], strides = [1, 1]} : vector<16x96xbf16> to vector<16x8xbf16>
    %253 = vector.extract_strided_slice %230 {offsets = [0, 72], sizes = [16, 8], strides = [1, 1]} : vector<16x96xbf16> to vector<16x8xbf16>
    %cst_83 = arith.constant dense<0.000000e+00> : vector<16x16xf32>
    %254 = tpu.matmul %251, %252, %cst_83 {dimension_numbers = #tpu.dot_dimension_numbers<[1], [1], [0], [0], [0, 0, 1, 0], [], []>} : vector<16x8xbf16>, vector<16x8xbf16>, vector<16x16xf32> -> vector<16x16xf32>
    %255 = arith.addf %254, %55 : vector<16x16xf32>
    %cst_84 = arith.constant dense<0xFF800000> : vector<16xf32>
    %256 = vector.multi_reduction <maximumf>, %255, %cst_84 [1] : vector<16x16xf32> to vector<16xf32>
    %257 = vector.shape_cast %256 : vector<16xf32> to vector<16x1xf32>
    %258 = vector.broadcast %257 : vector<16x1xf32> to vector<16x16xf32>
    %259 = arith.subf %255, %258 : vector<16x16xf32>
    %260 = math.exp %259 : vector<16x16xf32>
    %cst_85 = arith.constant dense<0.000000e+00> : vector<16xf32>
    %261 = vector.multi_reduction <add>, %260, %cst_85 [1] : vector<16x16xf32> to vector<16xf32>
    %262 = vector.shape_cast %261 : vector<16xf32> to vector<16x1xf32>
    %263 = tpu.reciprocal %262 {approx = true} : vector<16x1xf32> -> vector<16x1xf32>
    %264 = vector.broadcast %263 : vector<16x1xf32> to vector<16x16xf32>
    %265 = arith.mulf %260, %264 : vector<16x16xf32>
    %266 = arith.truncf %265 : vector<16x16xf32> to vector<16x16xbf16>
    %cst_86 = arith.constant dense<0.000000e+00> : vector<16x8xf32>
    %267 = tpu.matmul %266, %253, %cst_86 {dimension_numbers = #tpu.dot_dimension_numbers<[1], [0], [0], [1], [0, 0, 1, 1], [], []>} : vector<16x16xbf16>, vector<16x8xbf16>, vector<16x8xf32> -> vector<16x8xf32>
    %268 = arith.truncf %267 : vector<16x8xf32> to vector<16x8xbf16>
    %c176_87 = arith.constant 176 : index
    %c32_88 = arith.constant 32 : index
    %269 = vector.load %arg1[%c176_87, %c32_88] : memref<384x128xbf16, #tpu.memory_space<vmem>>, vector<8x32xbf16>
    %cst_89 = arith.constant dense<0.000000e+00> : vector<16x32xf32>
    %270 = tpu.matmul %268, %269, %cst_89 {dimension_numbers = #tpu.dot_dimension_numbers<[1], [0], [0], [1], [0, 0, 1, 1], [], []>} : vector<16x8xbf16>, vector<8x32xbf16>, vector<16x32xf32> -> vector<16x32xf32>
    %271 = arith.addf %250, %270 : vector<16x32xf32>
    %272 = vector.extract_strided_slice %230 {offsets = [0, 16], sizes = [16, 8], strides = [1, 1]} : vector<16x96xbf16> to vector<16x8xbf16>
    %273 = vector.extract_strided_slice %230 {offsets = [0, 48], sizes = [16, 8], strides = [1, 1]} : vector<16x96xbf16> to vector<16x8xbf16>
    %274 = vector.extract_strided_slice %230 {offsets = [0, 80], sizes = [16, 8], strides = [1, 1]} : vector<16x96xbf16> to vector<16x8xbf16>
    %cst_90 = arith.constant dense<0.000000e+00> : vector<16x16xf32>
    %275 = tpu.matmul %272, %273, %cst_90 {dimension_numbers = #tpu.dot_dimension_numbers<[1], [1], [0], [0], [0, 0, 1, 0], [], []>} : vector<16x8xbf16>, vector<16x8xbf16>, vector<16x16xf32> -> vector<16x16xf32>
    %276 = arith.addf %275, %55 : vector<16x16xf32>
    %cst_91 = arith.constant dense<0xFF800000> : vector<16xf32>
    %277 = vector.multi_reduction <maximumf>, %276, %cst_91 [1] : vector<16x16xf32> to vector<16xf32>
    %278 = vector.shape_cast %277 : vector<16xf32> to vector<16x1xf32>
    %279 = vector.broadcast %278 : vector<16x1xf32> to vector<16x16xf32>
    %280 = arith.subf %276, %279 : vector<16x16xf32>
    %281 = math.exp %280 : vector<16x16xf32>
    %cst_92 = arith.constant dense<0.000000e+00> : vector<16xf32>
    %282 = vector.multi_reduction <add>, %281, %cst_92 [1] : vector<16x16xf32> to vector<16xf32>
    %283 = vector.shape_cast %282 : vector<16xf32> to vector<16x1xf32>
    %284 = tpu.reciprocal %283 {approx = true} : vector<16x1xf32> -> vector<16x1xf32>
    %285 = vector.broadcast %284 : vector<16x1xf32> to vector<16x16xf32>
    %286 = arith.mulf %281, %285 : vector<16x16xf32>
    %287 = arith.truncf %286 : vector<16x16xf32> to vector<16x16xbf16>
    %cst_93 = arith.constant dense<0.000000e+00> : vector<16x8xf32>
    %288 = tpu.matmul %287, %274, %cst_93 {dimension_numbers = #tpu.dot_dimension_numbers<[1], [0], [0], [1], [0, 0, 1, 1], [], []>} : vector<16x16xbf16>, vector<16x8xbf16>, vector<16x8xf32> -> vector<16x8xf32>
    %289 = arith.truncf %288 : vector<16x8xf32> to vector<16x8xbf16>
    %c176_94 = arith.constant 176 : index
    %c64_95 = arith.constant 64 : index
    %290 = vector.load %arg1[%c176_94, %c64_95] : memref<384x128xbf16, #tpu.memory_space<vmem>>, vector<8x32xbf16>
    %cst_96 = arith.constant dense<0.000000e+00> : vector<16x32xf32>
    %291 = tpu.matmul %289, %290, %cst_96 {dimension_numbers = #tpu.dot_dimension_numbers<[1], [0], [0], [1], [0, 0, 1, 1], [], []>} : vector<16x8xbf16>, vector<8x32xbf16>, vector<16x32xf32> -> vector<16x32xf32>
    %292 = arith.addf %271, %291 : vector<16x32xf32>
    %293 = vector.extract_strided_slice %230 {offsets = [0, 24], sizes = [16, 8], strides = [1, 1]} : vector<16x96xbf16> to vector<16x8xbf16>
    %294 = vector.extract_strided_slice %230 {offsets = [0, 56], sizes = [16, 8], strides = [1, 1]} : vector<16x96xbf16> to vector<16x8xbf16>
    %295 = vector.extract_strided_slice %230 {offsets = [0, 88], sizes = [16, 8], strides = [1, 1]} : vector<16x96xbf16> to vector<16x8xbf16>
    %cst_97 = arith.constant dense<0.000000e+00> : vector<16x16xf32>
    %296 = tpu.matmul %293, %294, %cst_97 {dimension_numbers = #tpu.dot_dimension_numbers<[1], [1], [0], [0], [0, 0, 1, 0], [], []>} : vector<16x8xbf16>, vector<16x8xbf16>, vector<16x16xf32> -> vector<16x16xf32>
    %297 = arith.addf %296, %55 : vector<16x16xf32>
    %cst_98 = arith.constant dense<0xFF800000> : vector<16xf32>
    %298 = vector.multi_reduction <maximumf>, %297, %cst_98 [1] : vector<16x16xf32> to vector<16xf32>
    %299 = vector.shape_cast %298 : vector<16xf32> to vector<16x1xf32>
    %300 = vector.broadcast %299 : vector<16x1xf32> to vector<16x16xf32>
    %301 = arith.subf %297, %300 : vector<16x16xf32>
    %302 = math.exp %301 : vector<16x16xf32>
    %cst_99 = arith.constant dense<0.000000e+00> : vector<16xf32>
    %303 = vector.multi_reduction <add>, %302, %cst_99 [1] : vector<16x16xf32> to vector<16xf32>
    %304 = vector.shape_cast %303 : vector<16xf32> to vector<16x1xf32>
    %305 = tpu.reciprocal %304 {approx = true} : vector<16x1xf32> -> vector<16x1xf32>
    %306 = vector.broadcast %305 : vector<16x1xf32> to vector<16x16xf32>
    %307 = arith.mulf %302, %306 : vector<16x16xf32>
    %308 = arith.truncf %307 : vector<16x16xf32> to vector<16x16xbf16>
    %cst_100 = arith.constant dense<0.000000e+00> : vector<16x8xf32>
    %309 = tpu.matmul %308, %295, %cst_100 {dimension_numbers = #tpu.dot_dimension_numbers<[1], [0], [0], [1], [0, 0, 1, 1], [], []>} : vector<16x16xbf16>, vector<16x8xbf16>, vector<16x8xf32> -> vector<16x8xf32>
    %310 = arith.truncf %309 : vector<16x8xf32> to vector<16x8xbf16>
    %c176_101 = arith.constant 176 : index
    %c96_102 = arith.constant 96 : index
    %311 = vector.load %arg1[%c176_101, %c96_102] : memref<384x128xbf16, #tpu.memory_space<vmem>>, vector<8x32xbf16>
    %cst_103 = arith.constant dense<0.000000e+00> : vector<16x32xf32>
    %312 = tpu.matmul %310, %311, %cst_103 {dimension_numbers = #tpu.dot_dimension_numbers<[1], [0], [0], [1], [0, 0, 1, 1], [], []>} : vector<16x8xbf16>, vector<8x32xbf16>, vector<16x32xf32> -> vector<16x32xf32>
    %313 = arith.addf %292, %312 : vector<16x32xf32>
    %c161 = arith.constant 161 : index
    %c0_104 = arith.constant 0 : index
    %314 = vector.load %arg2[%c161, %c0_104] : memref<176x128xf32, #tpu.memory_space<vmem>>, vector<1x32xf32>
    %315 = vector.broadcast %314 : vector<1x32xf32> to vector<16x32xf32>
    %316 = arith.addf %313, %315 : vector<16x32xf32>
    %317 = arith.addf %223, %316 : vector<16x32xf32>
    %c162 = arith.constant 162 : index
    %c0_105 = arith.constant 0 : index
    %318 = vector.load %arg2[%c162, %c0_105] : memref<176x128xf32, #tpu.memory_space<vmem>>, vector<1x32xf32>
    %c163 = arith.constant 163 : index
    %c0_106 = arith.constant 0 : index
    %319 = vector.load %arg2[%c163, %c0_106] : memref<176x128xf32, #tpu.memory_space<vmem>>, vector<1x32xf32>
    %cst_107 = arith.constant dense<0.000000e+00> : vector<16xf32>
    %320 = vector.multi_reduction <add>, %317, %cst_107 [1] : vector<16x32xf32> to vector<16xf32>
    %321 = vector.shape_cast %320 : vector<16xf32> to vector<16x1xf32>
    %cst_108 = arith.constant 3.200000e+01 : f32
    %322 = vector.broadcast %cst_108 : f32 to vector<16x1xf32>
    %323 = arith.divf %321, %322 : vector<16x1xf32>
    %324 = vector.broadcast %323 : vector<16x1xf32> to vector<16x32xf32>
    %325 = arith.subf %317, %324 : vector<16x32xf32>
    %326 = arith.mulf %325, %325 : vector<16x32xf32>
    %cst_109 = arith.constant dense<0.000000e+00> : vector<16xf32>
    %327 = vector.multi_reduction <add>, %326, %cst_109 [1] : vector<16x32xf32> to vector<16xf32>
    %328 = vector.shape_cast %327 : vector<16xf32> to vector<16x1xf32>
    %cst_110 = arith.constant 3.200000e+01 : f32
    %329 = vector.broadcast %cst_110 : f32 to vector<16x1xf32>
    %330 = arith.divf %328, %329 : vector<16x1xf32>
    %331 = vector.broadcast %323 : vector<16x1xf32> to vector<16x32xf32>
    %332 = arith.subf %317, %331 : vector<16x32xf32>
    %cst_111 = arith.constant 9.99999996E-13 : f32
    %333 = vector.broadcast %cst_111 : f32 to vector<16x1xf32>
    %334 = arith.addf %330, %333 : vector<16x1xf32>
    %335 = math.rsqrt %334 : vector<16x1xf32>
    %336 = vector.broadcast %335 : vector<16x1xf32> to vector<16x32xf32>
    %337 = arith.mulf %332, %336 : vector<16x32xf32>
    %338 = vector.broadcast %318 : vector<1x32xf32> to vector<16x32xf32>
    %339 = arith.mulf %338, %337 : vector<16x32xf32>
    %340 = vector.broadcast %319 : vector<1x32xf32> to vector<16x32xf32>
    %341 = arith.addf %339, %340 : vector<16x32xf32>
    %342 = arith.truncf %341 : vector<16x32xf32> to vector<16x32xbf16>
    %c192 = arith.constant 192 : index
    %c0_112 = arith.constant 0 : index
    %343 = vector.load %arg1[%c192, %c0_112] : memref<384x128xbf16, #tpu.memory_space<vmem>>, vector<32x64xbf16>
    %cst_113 = arith.constant dense<0.000000e+00> : vector<16x64xf32>
    %344 = tpu.matmul %342, %343, %cst_113 {dimension_numbers = #tpu.dot_dimension_numbers<[1], [0], [0], [1], [0, 0, 1, 1], [], []>} : vector<16x32xbf16>, vector<32x64xbf16>, vector<16x64xf32> -> vector<16x64xf32>
    %c164 = arith.constant 164 : index
    %c0_114 = arith.constant 0 : index
    %345 = vector.load %arg2[%c164, %c0_114] : memref<176x128xf32, #tpu.memory_space<vmem>>, vector<1x64xf32>
    %346 = vector.broadcast %345 : vector<1x64xf32> to vector<16x64xf32>
    %347 = arith.addf %344, %346 : vector<16x64xf32>
    %cst_115 = arith.constant 5.000000e-01 : f32
    %348 = vector.broadcast %cst_115 : f32 to vector<16x64xf32>
    %349 = arith.mulf %348, %347 : vector<16x64xf32>
    %cst_116 = arith.constant 4.471500e-02 : f32
    %350 = vector.broadcast %cst_116 : f32 to vector<16x64xf32>
    %351 = arith.mulf %350, %347 : vector<16x64xf32>
    %352 = arith.mulf %351, %347 : vector<16x64xf32>
    %353 = arith.mulf %352, %347 : vector<16x64xf32>
    %354 = arith.addf %347, %353 : vector<16x64xf32>
    %cst_117 = arith.constant 0.797884583 : f32
    %355 = vector.broadcast %cst_117 : f32 to vector<16x64xf32>
    %356 = arith.mulf %355, %354 : vector<16x64xf32>
    %357 = math.tanh %356 : vector<16x64xf32>
    %cst_118 = arith.constant 1.000000e+00 : f32
    %358 = vector.broadcast %cst_118 : f32 to vector<16x64xf32>
    %359 = arith.addf %358, %357 : vector<16x64xf32>
    %360 = arith.mulf %349, %359 : vector<16x64xf32>
    %361 = arith.truncf %360 : vector<16x64xf32> to vector<16x64xbf16>
    %c224 = arith.constant 224 : index
    %c0_119 = arith.constant 0 : index
    %362 = vector.load %arg1[%c224, %c0_119] : memref<384x128xbf16, #tpu.memory_space<vmem>>, vector<64x32xbf16>
    %cst_120 = arith.constant dense<0.000000e+00> : vector<16x32xf32>
    %363 = tpu.matmul %361, %362, %cst_120 {dimension_numbers = #tpu.dot_dimension_numbers<[1], [0], [0], [1], [0, 0, 1, 1], [], []>} : vector<16x64xbf16>, vector<64x32xbf16>, vector<16x32xf32> -> vector<16x32xf32>
    %c165 = arith.constant 165 : index
    %c0_121 = arith.constant 0 : index
    %364 = vector.load %arg2[%c165, %c0_121] : memref<176x128xf32, #tpu.memory_space<vmem>>, vector<1x32xf32>
    %365 = vector.broadcast %364 : vector<1x32xf32> to vector<16x32xf32>
    %366 = arith.addf %363, %365 : vector<16x32xf32>
    %367 = arith.addf %341, %366 : vector<16x32xf32>
    %c166 = arith.constant 166 : index
    %c0_122 = arith.constant 0 : index
    %368 = vector.load %arg2[%c166, %c0_122] : memref<176x128xf32, #tpu.memory_space<vmem>>, vector<1x32xf32>
    %c167 = arith.constant 167 : index
    %c0_123 = arith.constant 0 : index
    %369 = vector.load %arg2[%c167, %c0_123] : memref<176x128xf32, #tpu.memory_space<vmem>>, vector<1x32xf32>
    %cst_124 = arith.constant dense<0.000000e+00> : vector<16xf32>
    %370 = vector.multi_reduction <add>, %367, %cst_124 [1] : vector<16x32xf32> to vector<16xf32>
    %371 = vector.shape_cast %370 : vector<16xf32> to vector<16x1xf32>
    %cst_125 = arith.constant 3.200000e+01 : f32
    %372 = vector.broadcast %cst_125 : f32 to vector<16x1xf32>
    %373 = arith.divf %371, %372 : vector<16x1xf32>
    %374 = vector.broadcast %373 : vector<16x1xf32> to vector<16x32xf32>
    %375 = arith.subf %367, %374 : vector<16x32xf32>
    %376 = arith.mulf %375, %375 : vector<16x32xf32>
    %cst_126 = arith.constant dense<0.000000e+00> : vector<16xf32>
    %377 = vector.multi_reduction <add>, %376, %cst_126 [1] : vector<16x32xf32> to vector<16xf32>
    %378 = vector.shape_cast %377 : vector<16xf32> to vector<16x1xf32>
    %cst_127 = arith.constant 3.200000e+01 : f32
    %379 = vector.broadcast %cst_127 : f32 to vector<16x1xf32>
    %380 = arith.divf %378, %379 : vector<16x1xf32>
    %381 = vector.broadcast %373 : vector<16x1xf32> to vector<16x32xf32>
    %382 = arith.subf %367, %381 : vector<16x32xf32>
    %cst_128 = arith.constant 9.99999996E-13 : f32
    %383 = vector.broadcast %cst_128 : f32 to vector<16x1xf32>
    %384 = arith.addf %380, %383 : vector<16x1xf32>
    %385 = math.rsqrt %384 : vector<16x1xf32>
    %386 = vector.broadcast %385 : vector<16x1xf32> to vector<16x32xf32>
    %387 = arith.mulf %382, %386 : vector<16x32xf32>
    %388 = vector.broadcast %368 : vector<1x32xf32> to vector<16x32xf32>
    %389 = arith.mulf %388, %387 : vector<16x32xf32>
    %390 = vector.broadcast %369 : vector<1x32xf32> to vector<16x32xf32>
    %391 = arith.addf %389, %390 : vector<16x32xf32>
    %392 = tpu.iota {dimensions = array<i32: 1>} : vector<10x16xi32>
    %393 = vector.broadcast %4 : vector<10x1xi32> to vector<10x16xi32>
    %394 = arith.cmpi eq, %393, %392 : vector<10x16xi32>
    %395 = arith.extui %394 : vector<10x16xi1> to vector<10x16xi32>
    %396 = arith.sitofp %395 : vector<10x16xi32> to vector<10x16xf32>
    %cst_129 = arith.constant dense<0.000000e+00> : vector<10x32xf32>
    %397 = tpu.matmul %396, %391, %cst_129 {dimension_numbers = #tpu.dot_dimension_numbers<[1], [0], [0], [1], [0, 0, 1, 1], [], []>} : vector<10x16xf32>, vector<16x32xf32>, vector<10x32xf32> -> vector<10x32xf32>
    %398 = vector.extract_strided_slice %397 {offsets = [0, 0], sizes = [8, 32], strides = [1, 1]} : vector<10x32xf32> to vector<8x32xf32>
    %399 = arith.truncf %398 : vector<8x32xf32> to vector<8x32xbf16>
    %c288 = arith.constant 288 : index
    %c0_130 = arith.constant 0 : index
    %400 = vector.load %arg1[%c288, %c0_130] : memref<384x128xbf16, #tpu.memory_space<vmem>>, vector<32x32xbf16>
    %cst_131 = arith.constant dense<0.000000e+00> : vector<8x32xf32>
    %401 = tpu.matmul %399, %400, %cst_131 {dimension_numbers = #tpu.dot_dimension_numbers<[1], [0], [0], [1], [0, 0, 1, 1], [], []>} : vector<8x32xbf16>, vector<32x32xbf16>, vector<8x32xf32> -> vector<8x32xf32>
    %c168 = arith.constant 168 : index
    %c0_132 = arith.constant 0 : index
    %402 = vector.load %arg2[%c168, %c0_132] : memref<176x128xf32, #tpu.memory_space<vmem>>, vector<1x32xf32>
    %403 = vector.broadcast %402 : vector<1x32xf32> to vector<8x32xf32>
    %404 = arith.addf %401, %403 : vector<8x32xf32>
    %cst_133 = arith.constant 5.000000e-01 : f32
    %405 = vector.broadcast %cst_133 : f32 to vector<8x32xf32>
    %406 = arith.mulf %405, %404 : vector<8x32xf32>
    %cst_134 = arith.constant 4.471500e-02 : f32
    %407 = vector.broadcast %cst_134 : f32 to vector<8x32xf32>
    %408 = arith.mulf %407, %404 : vector<8x32xf32>
    %409 = arith.mulf %408, %404 : vector<8x32xf32>
    %410 = arith.mulf %409, %404 : vector<8x32xf32>
    %411 = arith.addf %404, %410 : vector<8x32xf32>
    %cst_135 = arith.constant 0.797884583 : f32
    %412 = vector.broadcast %cst_135 : f32 to vector<8x32xf32>
    %413 = arith.mulf %412, %411 : vector<8x32xf32>
    %414 = math.tanh %413 : vector<8x32xf32>
    %cst_136 = arith.constant 1.000000e+00 : f32
    %415 = vector.broadcast %cst_136 : f32 to vector<8x32xf32>
    %416 = arith.addf %415, %414 : vector<8x32xf32>
    %417 = arith.mulf %406, %416 : vector<8x32xf32>
    %c169 = arith.constant 169 : index
    %c0_137 = arith.constant 0 : index
    %418 = vector.load %arg2[%c169, %c0_137] : memref<176x128xf32, #tpu.memory_space<vmem>>, vector<1x32xf32>
    %c170 = arith.constant 170 : index
    %c0_138 = arith.constant 0 : index
    %419 = vector.load %arg2[%c170, %c0_138] : memref<176x128xf32, #tpu.memory_space<vmem>>, vector<1x32xf32>
    %cst_139 = arith.constant dense<0.000000e+00> : vector<8xf32>
    %420 = vector.multi_reduction <add>, %417, %cst_139 [1] : vector<8x32xf32> to vector<8xf32>
    %421 = vector.shape_cast %420 : vector<8xf32> to vector<8x1xf32>
    %cst_140 = arith.constant 3.200000e+01 : f32
    %422 = vector.broadcast %cst_140 : f32 to vector<8x1xf32>
    %423 = arith.divf %421, %422 : vector<8x1xf32>
    %424 = vector.broadcast %423 : vector<8x1xf32> to vector<8x32xf32>
    %425 = arith.subf %417, %424 : vector<8x32xf32>
    %426 = arith.mulf %425, %425 : vector<8x32xf32>
    %cst_141 = arith.constant dense<0.000000e+00> : vector<8xf32>
    %427 = vector.multi_reduction <add>, %426, %cst_141 [1] : vector<8x32xf32> to vector<8xf32>
    %428 = vector.shape_cast %427 : vector<8xf32> to vector<8x1xf32>
    %cst_142 = arith.constant 3.200000e+01 : f32
    %429 = vector.broadcast %cst_142 : f32 to vector<8x1xf32>
    %430 = arith.divf %428, %429 : vector<8x1xf32>
    %431 = vector.broadcast %423 : vector<8x1xf32> to vector<8x32xf32>
    %432 = arith.subf %417, %431 : vector<8x32xf32>
    %cst_143 = arith.constant 9.99999996E-13 : f32
    %433 = vector.broadcast %cst_143 : f32 to vector<8x1xf32>
    %434 = arith.addf %430, %433 : vector<8x1xf32>
    %435 = math.rsqrt %434 : vector<8x1xf32>
    %436 = vector.broadcast %435 : vector<8x1xf32> to vector<8x32xf32>
    %437 = arith.mulf %432, %436 : vector<8x32xf32>
    %438 = vector.broadcast %418 : vector<1x32xf32> to vector<8x32xf32>
    %439 = arith.mulf %438, %437 : vector<8x32xf32>
    %440 = vector.broadcast %419 : vector<1x32xf32> to vector<8x32xf32>
    %441 = arith.addf %439, %440 : vector<8x32xf32>
    %442 = arith.truncf %441 : vector<8x32xf32> to vector<8x32xbf16>
    %c352 = arith.constant 352 : index
    %c0_144 = arith.constant 0 : index
    %443 = vector.load %arg1[%c352, %c0_144] : memref<384x128xbf16, #tpu.memory_space<vmem>>, vector<32x128xbf16>
    %cst_145 = arith.constant dense<0.000000e+00> : vector<8x128xf32>
    %444 = tpu.matmul %442, %443, %cst_145 {dimension_numbers = #tpu.dot_dimension_numbers<[1], [0], [0], [1], [0, 0, 1, 1], [], []>} : vector<8x32xbf16>, vector<32x128xbf16>, vector<8x128xf32> -> vector<8x128xf32>
    %c171 = arith.constant 171 : index
    %c0_146 = arith.constant 0 : index
    %445 = vector.load %arg2[%c171, %c0_146] : memref<176x128xf32, #tpu.memory_space<vmem>>, vector<1x128xf32>
    %446 = vector.broadcast %445 : vector<1x128xf32> to vector<8x128xf32>
    %447 = arith.addf %444, %446 : vector<8x128xf32>
    %cst_147 = arith.constant dense<0xFF800000> : vector<8xf32>
    %448 = vector.multi_reduction <maximumf>, %447, %cst_147 [1] : vector<8x128xf32> to vector<8xf32>
    %449 = vector.shape_cast %448 : vector<8xf32> to vector<8x1xf32>
    %450 = vector.broadcast %449 : vector<8x1xf32> to vector<8x128xf32>
    %451 = arith.subf %447, %450 : vector<8x128xf32>
    %452 = math.exp %451 : vector<8x128xf32>
    %cst_148 = arith.constant dense<0.000000e+00> : vector<8xf32>
    %453 = vector.multi_reduction <add>, %452, %cst_148 [1] : vector<8x128xf32> to vector<8xf32>
    %454 = vector.shape_cast %453 : vector<8xf32> to vector<8x1xf32>
    %455 = math.log %454 : vector<8x1xf32>
    %456 = vector.broadcast %455 : vector<8x1xf32> to vector<8x128xf32>
    %457 = arith.subf %451, %456 : vector<8x128xf32>
    %c0_149 = arith.constant 0 : index
    %c0_150 = arith.constant 0 : index
    %458 = vector.load %arg3[%c0_149, %c0_150] : memref<10x128xf32, #tpu.memory_space<vmem>>, vector<8x128xf32>
    tpu.vector_store %arg3[%c0_149, %c0_150], %457 {strides = array<i32>} : memref<10x128xf32, #tpu.memory_space<vmem>>, vector<8x128xf32>,
    %459 = vector.extract_strided_slice %397 {offsets = [8, 0], sizes = [2, 32], strides = [1, 1]} : vector<10x32xf32> to vector<2x32xf32>
    %460 = arith.truncf %459 : vector<2x32xf32> to vector<2x32xbf16>
    %c320 = arith.constant 320 : index
    %c0_151 = arith.constant 0 : index
    %461 = vector.load %arg1[%c320, %c0_151] : memref<384x128xbf16, #tpu.memory_space<vmem>>, vector<32x128xbf16>
    %cst_152 = arith.constant dense<0.000000e+00> : vector<2x128xf32>
    %462 = tpu.matmul %460, %461, %cst_152 {dimension_numbers = #tpu.dot_dimension_numbers<[1], [0], [0], [1], [0, 0, 1, 1], [], []>} : vector<2x32xbf16>, vector<32x128xbf16>, vector<2x128xf32> -> vector<2x128xf32>
    %c172 = arith.constant 172 : index
    %c0_153 = arith.constant 0 : index
    %463 = vector.load %arg2[%c172, %c0_153] : memref<176x128xf32, #tpu.memory_space<vmem>>, vector<1x128xf32>
    %464 = vector.broadcast %463 : vector<1x128xf32> to vector<2x128xf32>
    %465 = arith.addf %462, %464 : vector<2x128xf32>
    %c8 = arith.constant 8 : index
    %c0_154 = arith.constant 0 : index
    %466 = vector.load %arg3[%c8, %c0_154] : memref<10x128xf32, #tpu.memory_space<vmem>>, vector<2x128xf32>
    tpu.vector_store %arg3[%c8, %c0_154], %465 {strides = array<i32>} : memref<10x128xf32, #tpu.memory_space<vmem>>, vector<2x128xf32>,
    return
  }
}

</mosaic_0001>

<bundles_post_ra>
// kernel: plus_tfm_forward.1
= control target key start
LH: loop header
LB: loop body
LE: loop exit
PB: predicated region body
PF: predicated region fallthrough
CT: control target
= control target key end

     0   :  { %v3230_v0 = vmov 0   ;;  %v3231_v15 = vmov 1   ;;  %v21_v30 = vlaneseq  ;;  %v3232_v33 = vmov 1.0   ;;  %s3236_s12 = smov 96   ;;  %s3237_s15 = smov 88   ;;  %s3842_s0 = inlined_call_operand.vmem [shape: s32[24,16], index: 0, kind: input, shape index: {}]   ;;  %s3843_s2 = inlined_call_operand.vmem [shape: f32[176,128], index: 2, kind: input, shape index: {}]   ;;  %s3844_s1 = inlined_call_operand.vmem [shape: bf16[384,128], index: 1, kind: input, shape index: {}]   ;;  %s3845_s3 = inlined_call_operand.vmem [shape: f32[10,128], index: 3, kind: output, shape index: {}]  }
   0x1   :  { %3099 = vset.pattern.permute.xlu0 %v3230_v0  ;;  %v3272_v1 = vld [vmem:[%s3842_s0] sm:$0xff]  ;;  %v36_v3 = vld [vmem:[%s3843_s2 + $0x8] sm:$0xff]  ;;  %v37_v4 = vld [vmem:[%s3843_s2 + $0x10] sm:$0xff]  ;;  %3100 = vset.pattern.permute.xlu1 %v3231_v15  ;;  %vm156_vm2 = vcmask 261120   ;;  %v3233_v0 = vmov 0.0   ;;  %vm3234_vm3 = vmmov 0  }
   0x2   :  { %v35_v2 = vld [vmem:[%s3843_s2] sm:$0xff]  ;;  %24 = vperm.xlu0 %3099, %v3272_v1   ;;  %v38_v5 = vld [vmem:[%s3843_s2 + $0x18] sm:$0xff]  ;;  %v3290_v6 = vld [vmem:[%s3842_s0 + $0x8] sm:$0xff]  ;;  %v17_v12 = vcvt.s32.f32 %v3272_v1  ;;  %v3331_v31 = vand.u32 127, %v21_v30  ;;  %2813 = vmatprep.subr.bf16.mxu1 %v3233_v0  ;;  %vm286_vm4 = vcmask 64512   ;;  %vm334_vm7 = vcmask 130048  }
   0x3   :  { %v3044_v7 = vpack.c.bf16 %v36_v3, %v35_v2  ;;  %v3048_v8 = vpack.c.bf16 %v38_v5, %v37_v4  ;;  %v39_v9 = vld [vmem:[%s3843_s2 + $0x20] sm:$0xff]  ;;  %v40_v10 = vld [vmem:[%s3843_s2 + $0x28] sm:$0xff]  ;;  %v41_v13 = vld [vmem:[%s3843_s2 + $0x30] sm:$0xff]  ;;  %v18_v16 = vcvt.s32.f32 %v3290_v6  ;;  %2817 = vmatprep.mubr.msk.bf16.mxu1 %vm3234_vm3, %v3233_v0  ;;  %s3238_s16 = smov 64   ;;  %s3239_s17 = smov 120   ;;  %vm537_vm8 = vcmask 1043456  }
   0x4   :  { %v3052_v11 = vpack.c.bf16 %v40_v10, %v39_v9  ;;  %v42_v14 = vld [vmem:[%s3843_s2 + $0x38] sm:$0xff]  ;;  %138 = vperm.xlu1 %3100, %v17_v12   ;;  %v43_v18 = vld [vmem:[%s3843_s2 + $0x40] sm:$0xff]  ;;  %v44_v19 = vld [vmem:[%s3843_s2 + $0x48] sm:$0xff]  ;;  %s3240_s18 = smov 56   ;;  %s3241_s19 = smov 80   ;;  %vm1146_vm9 = vcmask 523264  }
   0x5   :  { %3045 = vmatprep.subr.bf16.mxu0 %v3044_v7  ;;  %v3056_v17 = vpack.c.bf16 %v42_v14, %v41_v13  ;;  %v3060_v20 = vpack.c.bf16 %v44_v19, %v43_v18  ;;  %v45_v21 = vld [vmem:[%s3843_s2 + $0x50] sm:$0xff]  ;;  %v46_v22 = vld [vmem:[%s3843_s2 + $0x58] sm:$0xff]  ;;  %v47_v24 = vld [vmem:[%s3843_s2 + $0x60] sm:$0xff]  ;;  %s3242_s20 = smov 112   ;;  %s3243_s23 = smov 48  }
   0x6   :  { %27 = vperm.xlu0 %3099, %v3290_v6   ;;  %3047 = vmatpush3.bf16.msra.mxu0 %v3044_v7  ;;  %v3064_v23 = vpack.c.bf16 %v46_v22, %v45_v21  ;;  %v48_v25 = vld [vmem:[%s3843_s2 + $0x68] sm:$0xff]  ;;  %v49_v27 = vld [vmem:[%s3843_s2 + $0x70] sm:$0xff]  ;;  %v50_v28 = vld [vmem:[%s3843_s2 + $0x78] sm:$0xff]  ;;  %s3244_s24 = smov 104   ;;  %s3245_s25 = smov 72  }
   0x7   :  { %3049 = vmatprep.subr.bf16.mxu0 %v3048_v8  ;;  %v3068_v26 = vpack.c.bf16 %v48_v25, %v47_v24  ;;  %v3072_v29 = vpack.c.bf16 %v50_v28, %v49_v27  ;;  %v2589_v36 = vld [vmem:[%s3843_s2 + $0x91] ss:$0 sm:$0xff]  ;;  %v52_v37 = vld [vmem:[%s3843_s2 + $0x88] sm:$0xff]  ;;  %v51_v39 = vld [vmem:[%s3843_s2 + $0x80] sm:$0xff]  ;;  %v3235_v28 = vmov 2   ;;  %s3246_s26 = smov 40  }
   0x8   :  { %143 = vperm.xlu1 %3100, %v18_v16   ;;  %v2588_v41 = vld [vmem:[%s3843_s2 + $0x90] ss:$0 sm:$0xff]  ;;  %v3105_v63 = vld [vmem:[%s3844_s1] sm:$0xff]   ;;  %v3106_v2 = vld [vmem:[%s3844_s1 + $0x8] sm:$0xff]   ;;  %s3247_s27 = smov 32  }
   0x9   :  { %2814 = vmatpush3.bf16.msra.mxu1 %v3105_v63  ;;  %v2590_v12 = vld [vmem:[%s3843_s2 + $0x92] ss:$0 sm:$0xff]  ;;  %v2591_v16 = vld [vmem:[%s3843_s2 + $0x93] ss:$0 sm:$0xff]  ;;  %v2595_v21 = vld [vmem:[%s3843_s2 + $0x98] ss:$0 sm:$0xff] }
   0xa   :  { %3051 = vmatpush3.bf16.msra.mxu0 %v3048_v8  ;;  %2815 = vmatprep.subr.bf16.mxu1 %v3233_v0 }
   0xb   :  { %3053 = vmatprep.subr.bf16.mxu0 %v3052_v11  ;;  %3101 = vset.pattern.permute.xlu0 %v3235_v28 }
   0xc   :  { %3102 = vset.pattern.permute.xlu1 %v3235_v28 }
   0xd   :  { %2816 = vmatpush3.bf16.msra.mxu1 %v3106_v2 }
   0xe   :  { %3055 = vmatpush3.bf16.msra.mxu0 %v3052_v11  ;;  %2821 = vmatprep.subr.bf16.mxu1 %v3233_v0 }
   0xf   :  { %3057 = vmatprep.subr.bf16.mxu0 %v3056_v17 }
  0x12   :  { %3059 = vmatpush3.bf16.msra.mxu0 %v3056_v17 }
  0x13   :  { %3061 = vmatprep.subr.bf16.mxu0 %v3060_v20 }
  0x16   :  { %3063 = vmatpush3.bf16.msra.mxu0 %v3060_v20 }
  0x17   :  { %3065 = vmatprep.subr.bf16.mxu0 %v3064_v23 }
  0x1a   :  { %3067 = vmatpush3.bf16.msra.mxu0 %v3064_v23 }
  0x1b   :  { %3069 = vmatprep.subr.bf16.mxu0 %v3068_v26 }
  0x1e   :  { %3071 = vmatpush3.bf16.msra.mxu0 %v3068_v26 }
  0x1f   :  { %3073 = vmatprep.subr.bf16.mxu0 %v3072_v29 }
  0x22   :  { %3075 = vmatpush3.bf16.msra.mxu0 %v3072_v29 }
  0x23   :  { %2839 = vmatprep.subr.bf16.mxu0 %v3233_v0 }
  0x81   :  { %v25_v32 = vpop.permute.xlu0 %24 }
  0x82   :  { %vm29_vm0 = vcmp.eq.s32.totalorder %v25_v32, %v3331_v31 }
  0x83   :  { %2810 = vmatprep.mubr.msk.f32.mxu0 %vm29_vm0, %v3232_v33  ;;  %v139_v35 = vpop.permute.xlu1 %138 }
  0x84   :  { %v150_v45 = vmul.f32 %v2589_v36, %v139_v35 }
  0x85   :  { %v28_v34 = vpop.permute.xlu0 %27 }
  0x86   :  { %vm30_vm1 = vcmp.eq.s32.totalorder %v28_v34, %v3331_v31 }
  0x87   :  { %2811 = vmatmul.mubr.msk.f32.vlgmr.msra.gmra.mrb[0].mxu0 %vm30_vm1, %v3232_v33  ;;  %v144_v38 = vpop.permute.xlu1 %143 }
  0x88   :  { %v151_v44 = vmul.f32 %v2589_v36, %v144_v38  ;;  %2841 = vmatprep.mubr.msk.bf16.mxu0 %vm3234_vm3, %v3233_v0 }
 0x15a   :  { %v2812_v40 = vpop.f32.mrb[0].mxu0 }
 0x15b   :  { %v125_v42 = vadd.f32 %v2812_v40, %v52_v37  ;;  %v119_v43 = vpop.f32.mrb[1].mxu0 }
 0x15c   :  { %v120_v46 = vadd.f32 %v119_v43, %v51_v39 }
 0x15d   :  { %v135_v47 = vadd.f32 %v2588_v41, %v125_v42 }
 0x15e   :  { %v134_v48 = vadd.f32 %v2588_v41, %v120_v46 }
 0x15f   :  { %v153_v49 = vadd.f32 %v151_v44, %v135_v47 }
 0x160   :  { %v152_v50 = vadd.f32 %v150_v45, %v134_v48 }
 0x161   :  { %v160_v51 = vsel %vm156_vm2, %v153_v49, 0.0 }
 0x162   :  { %161 = vadd.xlane.f32.xlu1 %v160_v51  ;;  %v157_v52 = vsel %vm156_vm2, %v152_v50, 0.0 }
 0x163   :  { %158 = vadd.xlane.f32.xlu0 %v157_v52 }
 0x1ef   :  { %v162_v53 = vpop.xlane.xlu1 %161 }
 0x1f0   :  { %v165_v54 = vmul.f32 0.03125, %v162_v53  ;;  %v159_v55 = vpop.xlane.xlu0 %158 }
 0x1f1   :  { %v164_v56 = vmul.f32 0.03125, %v159_v55 }
 0x1f2   :  { %v167_v57 = vsub.f32 %v153_v49, %v165_v54 }
 0x1f3   :  { %v166_v58 = vsub.f32 %v152_v50, %v164_v56 }
 0x1f4   :  { %v169_v61 = vmul.f32 %v167_v57, %v167_v57 }
 0x1f5   :  { %v168_v59 = vmul.f32 %v166_v58, %v166_v58 }
 0x1f6   :  { %v173_v62 = vsel %vm156_vm2, %v169_v61, 0.0 }
 0x1f7   :  { %v170_v60 = vsel %vm156_vm2, %v168_v59, 0.0 }
 0x1f8   :  { %171 = vadd.xlane.f32.xlu0 %v170_v60 }
 0x1fc   :  { %174 = vadd.xlane.f32.xlu0 %v173_v62 }
 0x212   :  { %201 = vperm.xlu0 %3101, %v3272_v1   ;;  %v2592_v1 = vld [vmem:[%s3842_s0 + $0x10] ss:$0 sm:$0xff] }
 0x285   :  { %v172_v3 = vpop.xlane.xlu0 %171 }
 0x286   :  { %v176_v4 = vmul.f32 0.03125, %v172_v3 }
 0x288   :  { %v178_v5 = vadd.f32 1e-12, %v176_v4 }
 0x289   :  { %v175_v7 = vpop.xlane.xlu0 %174 }
 0x28a   :  { %3129 = vrsqrt.f32 %v178_v5  ;;  %v177_v8 = vmul.f32 0.03125, %v175_v7 }
 0x28c   :  { %v179_v9 = vadd.f32 1e-12, %v177_v8 }
 0x28e   :  { %3131 = vrsqrt.f32 %v179_v9 }
 0x291   :  { %v202_v33 = vpop.permute.xlu0 %201 }
 0x292   :  { %vm206_vm5 = vcmp.eq.s32.totalorder %v2592_v1, %v202_v33 }
 0x294   :  { %v3130_v10 = vpop.eup %3129 }
 0x295   :  { %v182_v11 = vmul.f32 %v3130_v10, %v166_v58 }
 0x297   :  { %v188_v15 = vmul.f32 %v2590_v12, %v182_v11 }
 0x298   :  { %v3132_v13 = vpop.eup %3131 }
 0x299   :  { %v183_v14 = vmul.f32 %v3132_v13, %v167_v57  ;;  %v3371_v18 = vadd.f32 %v2591_v16, %v188_v15 }
 0x29b   :  { %v189_v17 = vmul.f32 %v2590_v12, %v183_v14 }
 0x29d   :  { %v3373_v19 = vadd.f32 %v2591_v16, %v189_v17 }
 0x29f   :  { %v216_v20 = vpack.c.bf16 %v3373_v19, %v3371_v18 }
 0x2a1   :  { %2818 = vmatmul.mubr.msk.bf16.vlgmr.msra.gmra.mrb[0].mxu1 %vm156_vm2, %v216_v20 }
 0x2a2   :  { %2823 = vmatprep.mubr.msk.bf16.mxu1 %vm3234_vm3, %v3233_v0 }
 0x374   :  { %v275_v22 = vpop.f32.mrb[0].mxu1 }
 0x375   :  { %v2819_v23 = vpop.f32.mrb[1].mxu1  ;;  %v276_v25 = vadd.f32 %v2595_v21, %v275_v22 }
 0x376   :  { %v278_v24 = vpop.f32.mrb[2].mxu1 }
 0x377   :  { %v279_v26 = vadd.f32 %v2595_v21, %v278_v24  ;;  %v2820_v27 = vpop.f32.mrb[3].mxu1 }
 0x379   :  { %v3384_v29 = vpack.c.bf16 %v279_v26, %v276_v25 }
 0x37b   :  { %284 = vrot.lane.b32.xlu1 %v3384_v29, %s3236_s12 }
 0x37f   :  { %204 = vperm.xlu1 %3102, %v3290_v6   ;;  %v2593_v6 = vsel %vm206_vm5, 1.0, %v3233_v0 }
 0x380   :  { %v212_v36 = vsub.f32 1.0, %v2593_v6 }
 0x382   :  { %v3400_v38 = vmul.f32 -10000.0, %v212_v36 }
 0x3ed   :  { %v285_v30 = vpop.permute.xlu1 %284 }
 0x3ee   :  { %v291_v32 = vsel %vm286_vm4, %v285_v30, 0 }
 0x3ef   :  { %2822 = vmatpush3.bf16.xpose.msra.mxu1 %v291_v32 }
 0x3f0   :  { %2827 = vmatprep.subr.bf16.mxu1 %v3233_v0 }
 0x3f6   :  { %2824 = vmatmul.mubr.msk.bf16.vlgmr.msra.gmra.mrb[4].mxu1 %vm286_vm4, %v3384_v29 }
 0x3f7   :  { %2829 = vmatprep.mubr.msk.bf16.mxu1 %vm3234_vm3, %v3233_v0 }
 0x3fe   :  { %v205_v34 = vpop.permute.xlu1 %204 }
 0x3ff   :  { %vm207_vm6 = vcmp.eq.s32.totalorder %v2592_v1, %v205_v34  ;;  %v406_v34 = vld [vmem:[%s3844_s1 + $0x10] sm:$0xf] }
 0x400   :  { %v2594_v35 = vsel %vm207_vm6, 1.0, %v3233_v0  ;;  %v3440_v6 = vcombine.low %v406_v34, %v406_v34 }
 0x401   :  { %v213_v37 = vsub.f32 1.0, %v2594_v35 }
 0x403   :  { %v3402_v39 = vmul.f32 -10000.0, %v213_v37 }
 0x4c9   :  { %v327_v40 = vpop.f32.mrb[4].mxu1 }
 0x4ca   :  { %v328_v41 = vadd.f32 %v327_v40, %v3400_v38  ;;  %v2825_v42 = vpop.f32.mrb[5].mxu1 }
 0x4cb   :  { %v330_v43 = vpop.f32.mrb[6].mxu1 }
 0x4cc   :  { %v331_v44 = vadd.f32 %v330_v43, %v3402_v39  ;;  %v2826_v45 = vpop.f32.mrb[7].mxu1  ;;  %v335_v46 = vsel %vm334_vm7, %v328_v41, -inf }
 0x4cd   :  { %336 = vmax.xlane.f32.xlu1 %v335_v46 }
 0x4ce   :  { %v338_v47 = vsel %vm334_vm7, %v331_v44, -inf }
 0x4cf   :  { %339 = vmax.xlane.f32.xlu0 %v338_v47  ;;  %v586_v47 = vsel %vm537_vm8, %v406_v34, 0 }
 0x4e5   :  { %409 = vrot.lane.b32.xlu0 %v3384_v29, %s3237_s15 }
 0x55a   :  { %v337_v48 = vpop.xlane.xlu1 %336 }
 0x55b   :  { %v341_v49 = vsub.f32 %v328_v41, %v337_v48 }
 0x55c   :  { %v340_v50 = vpop.xlane.xlu0 %339 }
 0x55d   :  { %v343_v51 = vmul.f32 1.442695, %v341_v49  ;;  %v342_v52 = vsub.f32 %v331_v44, %v340_v50 }
 0x55f   :  { %3133 = vpow2.f32 %v343_v51  ;;  %v345_v53 = vmul.f32 1.442695, %v342_v52 }
 0x560   :  { %v410_v3 = vpop.permute.xlu0 %409 }
 0x561   :  { %3135 = vpow2.f32 %v345_v53  ;;  %v415_v5 = vsel %vm286_vm4, %v410_v3, 0 }
 0x569   :  { %v3134_v54 = vpop.eup %3133 }
 0x56a   :  { %v347_v55 = vsel %vm334_vm7, %v3134_v54, 0.0 }
 0x56b   :  { %v3136_v56 = vpop.eup %3135  ;;  %348 = vadd.xlane.f32.xlu1 %v347_v55 }
 0x56c   :  { %v350_v57 = vsel %vm334_vm7, %v3136_v56, 0.0 }
 0x56f   :  { %351 = vadd.xlane.f32.xlu1 %v350_v57 }
 0x580   :  { %358 = vrot.lane.b32.xlu1 %v3384_v29, %s3238_s16 }
 0x584   :  { %407 = vrot.lane.b32.xlu1 %v3384_v29, %s3239_s17 }
 0x5f8   :  { %v349_v58 = vpop.xlane.xlu1 %348 }
 0x5f9   :  { %3137 = vrcp.f32 %v349_v58 }
 0x5fc   :  { %v352_v59 = vpop.xlane.xlu1 %351 }
 0x5fd   :  { %3139 = vrcp.f32 %v352_v59 }
 0x600   :  { %v359_v60 = vpop.permute.xlu1 %358 }
 0x601   :  { %2828 = vmatpush3.bf16.msra.mxu1 %v359_v60 }
 0x602   :  { %2833 = vmatprep.subr.bf16.mxu1 %v3233_v0 }
 0x603   :  { %v3138_v61 = vpop.eup %3137 }
 0x604   :  { %v355_v63 = vmul.f32 %v3138_v61, %v3134_v54  ;;  %v408_v7 = vpop.permute.xlu1 %407 }
 0x607   :  { %v3140_v62 = vpop.eup %3139 }
 0x608   :  { %v356_v2 = vmul.f32 %v3140_v62, %v3136_v56 }
 0x60a   :  { %v357_v4 = vpack.c.bf16 %v356_v2, %v355_v63 }
 0x60c   :  { %2830 = vmatmul.mubr.msk.bf16.vlgmr.msra.gmra.mrb[8].mxu1 %vm334_vm7, %v357_v4 }
 0x60d   :  { %2834 = vmatpush3.bf16.xpose.msra.mxu1 %v415_v5  ;;  %2835 = vmatprep.mubr.msk.bf16.mxu1 %vm3234_vm3, %v3233_v0 }
 0x60e   :  { %2845 = vmatprep.subr.bf16.mxu1 %v3233_v0 }
 0x614   :  { %2836 = vmatmul.mubr.msk.bf16.vlgmr.msra.gmra.mrb[12].mxu1 %vm286_vm4, %v408_v7 }
 0x615   :  { %2847 = vmatprep.mubr.msk.bf16.mxu1 %vm3234_vm3, %v3233_v0 }
 0x6df   :  { %v398_v8 = vpop.f32.mrb[8].mxu1 }
 0x6e0   :  { %v2831_v9 = vpop.f32.mrb[9].mxu1 }
 0x6e1   :  { %v401_v10 = vpop.f32.mrb[10].mxu1 }
 0x6e2   :  { %v405_v11 = vpack.c.bf16 %v401_v10, %v398_v8  ;;  %v2832_v12 = vpop.f32.mrb[11].mxu1 }
 0x6e7   :  { %v451_v13 = vpop.f32.mrb[12].mxu1 }
 0x6e8   :  { %v452_v14 = vadd.f32 %v451_v13, %v3400_v38  ;;  %v2837_v15 = vpop.f32.mrb[13].mxu1 }
 0x6e9   :  { %v454_v16 = vpop.f32.mrb[14].mxu1 }
 0x6ea   :  { %v455_v17 = vadd.f32 %v454_v16, %v3402_v39  ;;  %v2838_v20 = vpop.f32.mrb[15].mxu1  ;;  %v458_v21 = vsel %vm334_vm7, %v452_v14, -inf }
 0x6eb   :  { %459 = vmax.xlane.f32.xlu1 %v458_v21 }
 0x6ec   :  { %v461_v22 = vsel %vm334_vm7, %v455_v17, -inf }
 0x6ed   :  { %462 = vmax.xlane.f32.xlu0 %v461_v22 }
 0x703   :  { %532 = vrot.lane.b32.xlu0 %v3440_v6, %s3236_s12 }
 0x778   :  { %v460_v23 = vpop.xlane.xlu1 %459 }
 0x779   :  { %v464_v24 = vsub.f32 %v452_v14, %v460_v23 }
 0x77a   :  { %v463_v25 = vpop.xlane.xlu0 %462 }
 0x77b   :  { %v466_v26 = vmul.f32 1.442695, %v464_v24  ;;  %v465_v27 = vsub.f32 %v455_v17, %v463_v25 }
 0x77d   :  { %3141 = vpow2.f32 %v466_v26  ;;  %v468_v28 = vmul.f32 1.442695, %v465_v27 }
 0x77e   :  { %v533_v44 = vpop.permute.xlu0 %532 }
 0x77f   :  { %3143 = vpow2.f32 %v468_v28  ;;  %v539_v45 = vsel %vm537_vm8, %v533_v44, 0 }
 0x780   :  { %2846 = vmatpush3.bf16.msra.mxu1 %v539_v45 }
 0x781   :  { %2857 = vmatprep.subr.bf16.mxu1 %v3233_v0 }
 0x787   :  { %v3142_v30 = vpop.eup %3141 }
 0x788   :  { %v470_v32 = vsel %vm334_vm7, %v3142_v30, 0.0 }
 0x789   :  { %v3144_v1 = vpop.eup %3143  ;;  %471 = vadd.xlane.f32.xlu1 %v470_v32 }
 0x78a   :  { %v473_v33 = vsel %vm334_vm7, %v3144_v1, 0.0 }
 0x78d   :  { %474 = vadd.xlane.f32.xlu1 %v473_v33 }
 0x79e   :  { %481 = vrot.lane.b32.xlu1 %v3384_v29, %s3240_s18 }
 0x7a2   :  { %631 = vrot.lane.b32.xlu1 %v3384_v29, %s3241_s19 }
 0x7a6   :  { %629 = vrot.lane.b32.xlu1 %v3384_v29, %s3242_s20 }
 0x816   :  { %v472_v35 = vpop.xlane.xlu1 %471 }
 0x817   :  { %3145 = vrcp.f32 %v472_v35 }
 0x81a   :  { %v475_v36 = vpop.xlane.xlu1 %474 }
 0x81b   :  { %3147 = vrcp.f32 %v475_v36 }
 0x81e   :  { %v482_v37 = vpop.permute.xlu1 %481 }
 0x81f   :  { %2840 = vmatpush3.bf16.msra.mxu0 %v482_v37 }
 0x820   :  { %2851 = vmatprep.subr.bf16.mxu0 %v3233_v0 }
 0x821   :  { %v3146_v40 = vpop.eup %3145 }
 0x822   :  { %v478_v42 = vmul.f32 %v3146_v40, %v3142_v30  ;;  %v632_v50 = vpop.permute.xlu1 %631 }
 0x823   :  { %v637_v54 = vsel %vm286_vm4, %v632_v50, 0 }
 0x825   :  { %v3148_v41 = vpop.eup %3147 }
 0x826   :  { %v479_v43 = vmul.f32 %v3148_v41, %v3144_v1  ;;  %v630_v59 = vpop.permute.xlu1 %629 }
 0x828   :  { %v480_v46 = vpack.c.bf16 %v479_v43, %v478_v42 }
 0x82a   :  { %2842 = vmatmul.mubr.msk.bf16.vlgmr.msra.gmra.mrb[4].mxu0 %vm334_vm7, %v480_v46 }
 0x82b   :  { %2852 = vmatpush3.bf16.msra.mxu0 %v586_v47  ;;  %2853 = vmatprep.mubr.msk.bf16.mxu0 %vm3234_vm3, %v3233_v0 }
 0x82c   :  { %2863 = vmatprep.subr.bf16.mxu0 %v3233_v0 }
 0x832   :  { %2854 = vmatmul.mubr.msk.bf16.vlgmr.msra.gmra.mrb[8].mxu0 %vm286_vm4, %v405_v11 }
 0x833   :  { %2865 = vmatprep.mubr.msk.bf16.mxu0 %vm3234_vm3, %v3233_v0 }
 0x8fd   :  { %v521_v48 = vpop.f32.mrb[4].mxu0 }
 0x8fe   :  { %v2843_v49 = vpop.f32.mrb[5].mxu0 }
 0x8ff   :  { %v524_v51 = vpop.f32.mrb[6].mxu0 }
 0x900   :  { %v528_v52 = vpack.c.bf16 %v524_v51, %v521_v48  ;;  %v2844_v53 = vpop.f32.mrb[7].mxu0 }
 0x902   :  { %2848 = vmatmul.mubr.msk.bf16.vlgmr.msra.gmra.mrb[16].mxu1 %vm286_vm4, %v528_v52 }
 0x903   :  { %2858 = vmatpush3.bf16.xpose.msra.mxu1 %v637_v54  ;;  %2859 = vmatprep.mubr.msk.bf16.mxu1 %vm3234_vm3, %v3233_v0 }
 0x904   :  { %2869 = vmatprep.subr.bf16.mxu1 %v3233_v0 }
 0x905   :  { %v622_v55 = vpop.f32.mrb[8].mxu0 }
 0x906   :  { %v2855_v56 = vpop.f32.mrb[9].mxu0 }
 0x907   :  { %v625_v57 = vpop.f32.mrb[10].mxu0 }
 0x908   :  { %v2856_v58 = vpop.f32.mrb[11].mxu0 }
 0x90a   :  { %2860 = vmatmul.mubr.msk.bf16.vlgmr.msra.gmra.mrb[20].mxu1 %vm286_vm4, %v630_v59 }
 0x90b   :  { %2871 = vmatprep.mubr.msk.bf16.mxu1 %vm3234_vm3, %v3233_v0 }
 0x9d5   :  { %v575_v60 = vpop.f32.mrb[16].mxu1 }
 0x9d6   :  { %v3463_v61 = vadd.f32 %v622_v55, %v575_v60  ;;  %v2849_v62 = vpop.f32.mrb[17].mxu1 }
 0x9d7   :  { %v578_v63 = vpop.f32.mrb[18].mxu1 }
 0x9d8   :  { %v3465_v2 = vadd.f32 %v625_v57, %v578_v63  ;;  %v2850_v3 = vpop.f32.mrb[19].mxu1 }
 0x9dd   :  { %v673_v4 = vpop.f32.mrb[20].mxu1 }
 0x9de   :  { %v674_v5 = vadd.f32 %v673_v4, %v3400_v38  ;;  %v2861_v7 = vpop.f32.mrb[21].mxu1 }
 0x9df   :  { %v676_v8 = vpop.f32.mrb[22].mxu1 }
 0x9e0   :  { %v677_v9 = vadd.f32 %v676_v8, %v3402_v39  ;;  %v2862_v10 = vpop.f32.mrb[23].mxu1  ;;  %v680_v11 = vsel %vm334_vm7, %v674_v5, -inf }
 0x9e1   :  { %681 = vmax.xlane.f32.xlu0 %v680_v11 }
 0x9e2   :  { %v683_v12 = vsel %vm334_vm7, %v677_v9, -inf }
 0x9e3   :  { %684 = vmax.xlane.f32.xlu1 %v683_v12 }
 0x9f4   :  { %703 = vrot.lane.b32.xlu1 %v3384_v29, %s3243_s23 }
 0x9f8   :  { %802 = vrot.lane.b32.xlu1 %v3384_v29, %s3244_s24 }
 0xa6e   :  { %v682_v13 = vpop.xlane.xlu0 %681 }
 0xa6f   :  { %v686_v14 = vsub.f32 %v674_v5, %v682_v13 }
 0xa70   :  { %v685_v15 = vpop.xlane.xlu1 %684 }
 0xa71   :  { %v688_v16 = vmul.f32 1.442695, %v686_v14  ;;  %v687_v17 = vsub.f32 %v677_v9, %v685_v15 }
 0xa73   :  { %3149 = vpow2.f32 %v688_v16  ;;  %v690_v20 = vmul.f32 1.442695, %v687_v17 }
 0xa74   :  { %v704_v21 = vpop.permute.xlu1 %703 }
 0xa75   :  { %3151 = vpow2.f32 %v690_v20  ;;  %2864 = vmatpush3.bf16.msra.mxu0 %v704_v21 }
 0xa76   :  { %2875 = vmatprep.subr.bf16.mxu0 %v3233_v0 }
 0xa78   :  { %v803_v36 = vpop.permute.xlu1 %802 }
 0xa7d   :  { %v3150_v22 = vpop.eup %3149 }
 0xa7e   :  { %v692_v23 = vsel %vm334_vm7, %v3150_v22, 0.0 }
 0xa7f   :  { %v3152_v24 = vpop.eup %3151  ;;  %693 = vadd.xlane.f32.xlu0 %v692_v23 }
 0xa80   :  { %v695_v25 = vsel %vm334_vm7, %v3152_v24, 0.0 }
 0xa83   :  { %696 = vadd.xlane.f32.xlu0 %v695_v25 }
 0xa99   :  { %804 = vrot.lane.b32.xlu0 %v3384_v29, %s3245_s25 }
 0xb0c   :  { %v694_v26 = vpop.xlane.xlu0 %693 }
 0xb0d   :  { %3153 = vrcp.f32 %v694_v26 }
 0xb10   :  { %v697_v27 = vpop.xlane.xlu0 %696 }
 0xb11   :  { %3155 = vrcp.f32 %v697_v27 }
 0xb14   :  { %v805_v33 = vpop.permute.xlu0 %804 }
 0xb15   :  { %v810_v35 = vsel %vm286_vm4, %v805_v33, 0 }
 0xb17   :  { %v3154_v28 = vpop.eup %3153 }
 0xb18   :  { %v700_v32 = vmul.f32 %v3154_v28, %v3150_v22 }
 0xb1b   :  { %v3156_v30 = vpop.eup %3155 }
 0xb1c   :  { %v701_v1 = vmul.f32 %v3156_v30, %v3152_v24 }
 0xb1e   :  { %v702_v34 = vpack.c.bf16 %v701_v1, %v700_v32 }
 0xb20   :  { %2866 = vmatmul.mubr.msk.bf16.vlgmr.msra.gmra.mrb[12].mxu0 %vm334_vm7, %v702_v34 }
 0xb21   :  { %2876 = vmatpush3.bf16.xpose.msra.mxu0 %v810_v35  ;;  %2877 = vmatprep.mubr.msk.bf16.mxu0 %vm3234_vm3, %v3233_v0 }
 0xb22   :  { %2887 = vmatprep.subr.bf16.mxu0 %v3233_v0 }
 0xb28   :  { %2878 = vmatmul.mubr.msk.bf16.vlgmr.msra.gmra.mrb[16].mxu0 %vm286_vm4, %v803_v36 }
 0xb29   :  { %2889 = vmatprep.mubr.msk.bf16.mxu0 %vm3234_vm3, %v3233_v0 }
 0xbf3   :  { %v743_v37 = vpop.f32.mrb[12].mxu0 }
 0xbf4   :  { %v2867_v40 = vpop.f32.mrb[13].mxu0 }
 0xbf5   :  { %v746_v41 = vpop.f32.mrb[14].mxu0 }
 0xbf6   :  { %v750_v42 = vpack.c.bf16 %v746_v41, %v743_v37  ;;  %v2868_v43 = vpop.f32.mrb[15].mxu0 }
 0xbfb   :  { %v846_v44 = vpop.f32.mrb[16].mxu0 }
 0xbfc   :  { %v847_v45 = vadd.f32 %v846_v44, %v3400_v38  ;;  %v2879_v46 = vpop.f32.mrb[17].mxu0 }
 0xbfd   :  { %v849_v47 = vpop.f32.mrb[18].mxu0 }
 0xbfe   :  { %v850_v48 = vadd.f32 %v849_v47, %v3402_v39  ;;  %v2880_v49 = vpop.f32.mrb[19].mxu0  ;;  %v853_v50 = vsel %vm334_vm7, %v847_v45, -inf }
 0xbff   :  { %854 = vmax.xlane.f32.xlu1 %v853_v50  ;;  %v3109_v49 = vld [vmem:[%s3844_s1 + $0x20] sm:$0xff]  }
 0xc00   :  { %v856_v51 = vsel %vm334_vm7, %v850_v48, -inf }
 0xc01   :  { %857 = vmax.xlane.f32.xlu0 %v856_v51 }
 0xc8c   :  { %v855_v52 = vpop.xlane.xlu1 %854 }
 0xc8d   :  { %v859_v53 = vsub.f32 %v847_v45, %v855_v52 }
 0xc8e   :  { %v858_v54 = vpop.xlane.xlu0 %857 }
 0xc8f   :  { %v861_v55 = vmul.f32 1.442695, %v859_v53  ;;  %v860_v56 = vsub.f32 %v850_v48, %v858_v54 }
 0xc91   :  { %3157 = vpow2.f32 %v861_v55  ;;  %v863_v57 = vmul.f32 1.442695, %v860_v56 }
 0xc93   :  { %3159 = vpow2.f32 %v863_v57 }
 0xc9b   :  { %v3158_v58 = vpop.eup %3157 }
 0xc9c   :  { %v865_v59 = vsel %vm334_vm7, %v3158_v58, 0.0 }
 0xc9d   :  { %v3160_v60 = vpop.eup %3159  ;;  %866 = vadd.xlane.f32.xlu0 %v865_v59 }
 0xc9e   :  { %v868_v62 = vsel %vm334_vm7, %v3160_v60, 0.0 }
 0xc9f   :  { %869 = vadd.xlane.f32.xlu1 %v868_v62 }
 0xcb0   :  { %876 = vrot.lane.b32.xlu1 %v3384_v29, %s3246_s26 }
 0xcb3   :  { %751 = vrot.lane.b32.xlu0 %v3440_v6, %s3238_s16 }
 0xcb4   :  { %924 = vrot.lane.b32.xlu1 %v3440_v6, %s3247_s27 }
 0xd2a   :  { %v867_v63 = vpop.xlane.xlu0 %866 }
 0xd2b   :  { %3161 = vrcp.f32 %v867_v63  ;;  %v2614_v63 = vld [vmem:[%s3843_s2 + $0x9b] ss:$0 sm:$0xff] }
 0xd2c   :  { %v870_v3 = vpop.xlane.xlu1 %869 }
 0xd2d   :  { %3163 = vrcp.f32 %v870_v3 }
 0xd2e   :  { %v752_v4 = vpop.permute.xlu0 %751 }
 0xd2f   :  { %v757_v5 = vsel %vm537_vm8, %v752_v4, 0 }
 0xd30   :  { %2870 = vmatpush3.bf16.msra.mxu1 %v757_v5  ;;  %v877_v7 = vpop.permute.xlu1 %876 }
 0xd31   :  { %2881 = vmatprep.subr.bf16.mxu1 %v3233_v0 }
 0xd33   :  { %2872 = vmatmul.mubr.msk.bf16.vlgmr.msra.gmra.mrb[24].mxu1 %vm286_vm4, %v750_v42 }
 0xd34   :  { %2882 = vmatpush3.bf16.msra.mxu1 %v877_v7  ;;  %2883 = vmatprep.mubr.msk.bf16.mxu1 %vm3234_vm3, %v3233_v0  ;;  %v925_v11 = vpop.permute.xlu1 %924 }
 0xd35   :  { %v3162_v29 = vpop.eup %3161  ;;  %2893 = vmatprep.subr.bf16.mxu1 %v3233_v0  ;;  %v930_v12 = vsel %vm537_vm8, %v925_v11, 0 }
 0xd36   :  { %v873_v8 = vmul.f32 %v3162_v29, %v3158_v58  ;;  %2888 = vmatpush3.bf16.msra.mxu0 %v930_v12  ;;  %v2613_v58 = vld [vmem:[%s3843_s2 + $0x9a] ss:$0 sm:$0xff]  ;;  %v3110_v29 = vld [vmem:[%s3844_s1 + $0x28] sm:$0xff]  }
 0xd37   :  { %v3164_v6 = vpop.eup %3163  ;;  %2901 = vmatprep.subr.bf16.mxu0 %v3233_v0 }
 0xd38   :  { %v874_v9 = vmul.f32 %v3164_v6, %v3160_v60  ;;  %v3111_v6 = vld [vmem:[%s3844_s1 + $0x30] sm:$0xff]  }
 0xd3a   :  { %v875_v10 = vpack.c.bf16 %v874_v9, %v873_v8  ;;  %v3112_v8 = vld [vmem:[%s3844_s1 + $0x38] sm:$0xff]   ;;  %v3113_v9 = vld [vmem:[%s3844_s1 + $0x40] sm:$0xff]  }
 0xd3c   :  { %2884 = vmatmul.mubr.msk.bf16.vlgmr.msra.gmra.mrb[28].mxu1 %vm334_vm7, %v875_v10  ;;  %v2615_v10 = vld [vmem:[%s3843_s2 + $0x9c] ss:$0 sm:$0xff] }
 0xd3d   :  { %2897 = vmatprep.mubr.msk.bf16.mxu1 %vm3234_vm3, %v3233_v0 }
 0xe06   :  { %v793_v13 = vpop.f32.mrb[24].mxu1 }
 0xe07   :  { %v800_v14 = vadd.f32 %v793_v13, %v3463_v61  ;;  %v2873_v15 = vpop.f32.mrb[25].mxu1  ;;  %v2612_v61 = vld [vmem:[%s3843_s2 + $0x99] ss:$0 sm:$0xff] }
 0xe08   :  { %v796_v16 = vpop.f32.mrb[26].mxu1 }
 0xe09   :  { %v801_v17 = vadd.f32 %v796_v16, %v3465_v2  ;;  %v2874_v20 = vpop.f32.mrb[27].mxu1 }
 0xe0f   :  { %v916_v21 = vpop.f32.mrb[28].mxu1 }
 0xe10   :  { %v2885_v22 = vpop.f32.mrb[29].mxu1 }
 0xe11   :  { %v919_v23 = vpop.f32.mrb[30].mxu1 }
 0xe12   :  { %v923_v24 = vpack.c.bf16 %v919_v23, %v916_v21  ;;  %v2886_v25 = vpop.f32.mrb[31].mxu1 }
 0xe14   :  { %2890 = vmatmul.mubr.msk.bf16.vlgmr.msra.gmra.mrb[20].mxu0 %vm286_vm4, %v923_v24 }
 0xe15   :  { %2909 = vmatprep.mubr.msk.bf16.mxu0 %vm3234_vm3, %v3233_v0  ;;  %2902 = vmatpush3.bf16.msra.mxu0 %v3110_v29  ;;  %v2625_v29 = vld [vmem:[%s3843_s2 + $0x9e] ss:$0 sm:$0xff] }
 0xe16   :  { %2903 = vmatprep.subr.bf16.mxu0 %v3233_v0 }
 0xe19   :  { %2904 = vmatpush3.bf16.msra.mxu0 %v3111_v6 }
 0xe1a   :  { %2905 = vmatprep.subr.bf16.mxu0 %v3233_v0 }
 0xe1d   :  { %2906 = vmatpush3.bf16.msra.mxu0 %v3112_v8 }
 0xe1e   :  { %2907 = vmatprep.subr.bf16.mxu0 %v3233_v0 }
 0xe21   :  { %2908 = vmatpush3.bf16.msra.mxu0 %v3113_v9 }
 0xe22   :  { %2927 = vmatprep.subr.bf16.mxu0 %v3233_v0 }
 0xee7   :  { %v966_v26 = vpop.f32.mrb[20].mxu0 }
 0xee8   :  { %v973_v27 = vadd.f32 %v966_v26, %v800_v14  ;;  %v2891_v28 = vpop.f32.mrb[21].mxu0 }
 0xee9   :  { %v969_v30 = vpop.f32.mrb[22].mxu0 }
 0xeea   :  { %v980_v2 = vadd.f32 %v2612_v61, %v973_v27  ;;  %v974_v32 = vadd.f32 %v969_v30, %v801_v17  ;;  %v2892_v1 = vpop.f32.mrb[23].mxu0 }
 0xeec   :  { %v981_v33 = vadd.f32 %v2612_v61, %v974_v32  ;;  %v982_v34 = vadd.f32 %v980_v2, %v3371_v18 }
 0xeee   :  { %v986_v35 = vsel %vm156_vm2, %v982_v34, 0.0  ;;  %v983_v36 = vadd.f32 %v981_v33, %v3373_v19  ;;  %v3108_v19 = vld [vmem:[%s3844_s1 + $0x18] sm:$0xff]  }
 0xeef   :  { %987 = vadd.xlane.f32.xlu0 %v986_v35  ;;  %2894 = vmatpush3.bf16.msra.mxu1 %v3108_v19 }
 0xef0   :  { %v989_v37 = vsel %vm156_vm2, %v983_v36, 0.0  ;;  %2895 = vmatprep.subr.bf16.mxu1 %v3233_v0 }
 0xef1   :  { %990 = vadd.xlane.f32.xlu1 %v989_v37  ;;  %v2619_v37 = vld [vmem:[%s3843_s2 + $0x9d] ss:$0 sm:$0xff] }
 0xef3   :  { %2896 = vmatpush3.bf16.msra.mxu1 %v3109_v49 }
 0xef4   :  { %2913 = vmatprep.subr.bf16.mxu1 %v3233_v0 }
 0xf7c   :  { %v988_v40 = vpop.xlane.xlu0 %987 }
 0xf7d   :  { %v992_v41 = vmul.f32 0.03125, %v988_v40 }
 0xf7e   :  { %v991_v42 = vpop.xlane.xlu1 %990 }
 0xf7f   :  { %v994_v43 = vsub.f32 %v982_v34, %v992_v41  ;;  %v993_v44 = vmul.f32 0.03125, %v991_v42 }
 0xf81   :  { %v995_v45 = vsub.f32 %v983_v36, %v993_v44  ;;  %v996_v46 = vmul.f32 %v994_v43, %v994_v43 }
 0xf83   :  { %v998_v47 = vsel %vm156_vm2, %v996_v46, 0.0  ;;  %v997_v48 = vmul.f32 %v995_v45, %v995_v45 }
 0xf84   :  { %999 = vadd.xlane.f32.xlu0 %v998_v47 }
 0xf85   :  { %v1001_v18 = vsel %vm156_vm2, %v997_v48, 0.0 }
 0xf88   :  { %1002 = vadd.xlane.f32.xlu0 %v1001_v18 }
0x1011   :  { %v1000_v50 = vpop.xlane.xlu0 %999 }
0x1012   :  { %v1004_v51 = vmul.f32 0.03125, %v1000_v50 }
0x1014   :  { %v1006_v52 = vadd.f32 1e-12, %v1004_v51 }
0x1015   :  { %v1003_v53 = vpop.xlane.xlu0 %1002 }
0x1016   :  { %3165 = vrsqrt.f32 %v1006_v52  ;;  %v1005_v54 = vmul.f32 0.03125, %v1003_v53 }
0x1018   :  { %v1007_v55 = vadd.f32 1e-12, %v1005_v54 }
0x101a   :  { %3167 = vrsqrt.f32 %v1007_v55 }
0x1020   :  { %v3166_v56 = vpop.eup %3165 }
0x1021   :  { %v1010_v57 = vmul.f32 %v3166_v56, %v994_v43 }
0x1023   :  { %v1016_v60 = vmul.f32 %v2613_v58, %v1010_v57 }
0x1024   :  { %v3168_v59 = vpop.eup %3167 }
0x1025   :  { %v1011_v62 = vmul.f32 %v3168_v59, %v995_v45  ;;  %v1022_v4 = vadd.f32 %v2614_v63, %v1016_v60  ;;  %v3115_v59 = vld [vmem:[%s3844_s1 + $0x50] sm:$0xff]  }
0x1027   :  { %v1017_v3 = vmul.f32 %v2613_v58, %v1011_v62  ;;  %v3114_v58 = vld [vmem:[%s3844_s1 + $0x48] sm:$0xff]  }
0x1029   :  { %v1023_v5 = vadd.f32 %v2614_v63, %v1017_v3 }
0x102b   :  { %v1024_v7 = vpack.c.bf16 %v1023_v5, %v1022_v4 }
0x102d   :  { %2898 = vmatmul.mubr.msk.bf16.vlgmr.msra.gmra.mrb[32].mxu1 %vm156_vm2, %v1024_v7 }
0x102e   :  { %2917 = vmatprep.mubr.msk.bf16.mxu1 %vm3234_vm3, %v3233_v0  ;;  %2914 = vmatpush3.bf16.msra.mxu1 %v3114_v58 }
0x102f   :  { %2915 = vmatprep.subr.bf16.mxu1 %v3233_v0 }
0x1032   :  { %2916 = vmatpush3.bf16.msra.mxu1 %v3115_v59 }
0x1033   :  { %2921 = vmatprep.subr.bf16.mxu1 %v3233_v0 }
0x1100   :  { %v1083_v11 = vpop.f32.mrb[32].mxu1 }
0x1101   :  { %v1084_v12 = vadd.f32 %v2615_v10, %v1083_v11  ;;  %v2899_v13 = vpop.f32.mrb[33].mxu1  ;;  %v2626_v11 = vld [vmem:[%s3843_s2 + $0x9f] ss:$0 sm:$0xff] }
0x1102   :  { %v1086_v14 = vpop.f32.mrb[34].mxu1 }
0x1103   :  { %v1092_v15 = vmul.f32 0.044715, %v1084_v12  ;;  %v1087_v16 = vadd.f32 %v2615_v10, %v1086_v14  ;;  %v2900_v17 = vpop.f32.mrb[35].mxu1  ;;  %v1090_v32 = vmul.f32 0.5, %v1084_v12 }
0x1105   :  { %v1094_v20 = vmul.f32 %v1092_v15, %v1084_v12  ;;  %v1093_v21 = vmul.f32 0.044715, %v1087_v16  ;;  %v1091_v1 = vmul.f32 0.5, %v1087_v16 }
0x1107   :  { %v1096_v22 = vmul.f32 %v1094_v20, %v1084_v12  ;;  %v1095_v23 = vmul.f32 %v1093_v21, %v1087_v16 }
0x1109   :  { %v1098_v24 = vadd.f32 %v1096_v22, %v1084_v12  ;;  %v1097_v25 = vmul.f32 %v1095_v23, %v1087_v16 }
0x110b   :  { %v1100_v26 = vmul.f32 0.7978846, %v1098_v24  ;;  %v1099_v61 = vadd.f32 %v1097_v25, %v1087_v16  ;;  %v2627_v16 = vld [vmem:[%s3843_s2 + $0xa0] ss:$0 sm:$0xff] }
0x110d   :  { %3169 = vtanh.f32 %v1100_v26  ;;  %v1101_v27 = vmul.f32 0.7978846, %v1099_v61 }
0x110f   :  { %3171 = vtanh.f32 %v1101_v27 }
0x1117   :  { %v3170_v28 = vpop.eup %3169 }
0x1118   :  { %v1104_v30 = vadd.f32 1.0, %v3170_v28 }
0x1119   :  { %v3172_v2 = vpop.eup %3171 }
0x111a   :  { %v1105_v33 = vadd.f32 1.0, %v3172_v2  ;;  %v1106_v34 = vmul.f32 %v1104_v30, %v1090_v32 }
0x111c   :  { %v1107_v35 = vmul.f32 %v1105_v33, %v1091_v1 }
0x111e   :  { %v1108_v36 = vpack.c.bf16 %v1107_v35, %v1106_v34 }
0x1120   :  { %2910 = vmatmul.mubr.msk.bf16.vlgmr.msra.gmra.mrb[24].mxu0 %vm1146_vm9, %v1108_v36 }
0x1121   :  { %2929 = vmatprep.mubr.msk.bf16.mxu0 %vm3234_vm3, %v3233_v0 }
0x11f3   :  { %v1184_v40 = vpop.f32.mrb[24].mxu0 }
0x11f4   :  { %v1185_v41 = vadd.f32 %v2619_v37, %v1184_v40  ;;  %v2911_v42 = vpop.f32.mrb[25].mxu0 }
0x11f5   :  { %v1187_v43 = vpop.f32.mrb[26].mxu0 }
0x11f6   :  { %v1188_v44 = vadd.f32 %v2619_v37, %v1187_v43  ;;  %v2912_v45 = vpop.f32.mrb[27].mxu0  ;;  %v1191_v46 = vadd.f32 %v1185_v41, %v1022_v4 }
0x11f8   :  { %v1195_v47 = vsel %vm156_vm2, %v1191_v46, 0.0  ;;  %v1192_v48 = vadd.f32 %v1188_v44, %v1023_v5 }
0x11f9   :  { %1196 = vadd.xlane.f32.xlu1 %v1195_v47 }
0x11fa   :  { %v1198_v18 = vsel %vm156_vm2, %v1192_v48, 0.0 }
0x11fb   :  { %1199 = vadd.xlane.f32.xlu0 %v1198_v18 }
0x1286   :  { %v1197_v19 = vpop.xlane.xlu1 %1196 }
0x1287   :  { %v1201_v49 = vmul.f32 0.03125, %v1197_v19 }
0x1288   :  { %v1200_v50 = vpop.xlane.xlu0 %1199 }
0x1289   :  { %v1203_v51 = vsub.f32 %v1191_v46, %v1201_v49  ;;  %v1202_v52 = vmul.f32 0.03125, %v1200_v50 }
0x128b   :  { %v1204_v53 = vsub.f32 %v1192_v48, %v1202_v52  ;;  %v1205_v54 = vmul.f32 %v1203_v51, %v1203_v51 }
0x128d   :  { %v1207_v55 = vsel %vm156_vm2, %v1205_v54, 0.0  ;;  %v1206_v56 = vmul.f32 %v1204_v53, %v1204_v53 }
0x128e   :  { %1208 = vadd.xlane.f32.xlu1 %v1207_v55 }
0x128f   :  { %v1210_v57 = vsel %vm156_vm2, %v1206_v56, 0.0 }
0x1290   :  { %1211 = vadd.xlane.f32.xlu0 %v1210_v57 }
0x131b   :  { %v1209_v60 = vpop.xlane.xlu1 %1208 }
0x131c   :  { %v1213_v62 = vmul.f32 0.03125, %v1209_v60 }
0x131d   :  { %v1212_v63 = vpop.xlane.xlu0 %1211 }
0x131e   :  { %v1215_v3 = vadd.f32 1e-12, %v1213_v62  ;;  %v1214_v4 = vmul.f32 0.03125, %v1212_v63 }
0x1320   :  { %3173 = vrsqrt.f32 %v1215_v3  ;;  %v1216_v5 = vadd.f32 1e-12, %v1214_v4 }
0x1322   :  { %3175 = vrsqrt.f32 %v1216_v5 }
0x132a   :  { %v3174_v7 = vpop.eup %3173 }
0x132b   :  { %v1219_v6 = vmul.f32 %v3174_v7, %v1203_v51  ;;  %v1421_v7 = vld [vmem:[%s3844_s1 + $0x58] sm:$0xf] }
0x132c   :  { %v3176_v8 = vpop.eup %3175 }
0x132d   :  { %v1225_v9 = vmul.f32 %v2625_v29, %v1219_v6  ;;  %v1220_v10 = vmul.f32 %v3176_v8, %v1204_v53 }
0x132f   :  { %v1226_v12 = vmul.f32 %v2625_v29, %v1220_v10  ;;  %v3585_v13 = vadd.f32 %v2626_v11, %v1225_v9  ;;  %v3633_v29 = vcombine.low %v1421_v7, %v1421_v7 }
0x1331   :  { %v3587_v14 = vadd.f32 %v2626_v11, %v1226_v12 }
0x1333   :  { %v1233_v15 = vpack.c.bf16 %v3587_v14, %v3585_v13 }
0x1335   :  { %2918 = vmatmul.mubr.msk.bf16.vlgmr.msra.gmra.mrb[36].mxu1 %vm156_vm2, %v1233_v15 }
0x1336   :  { %2923 = vmatprep.mubr.msk.bf16.mxu1 %vm3234_vm3, %v3233_v0 }
0x1408   :  { %v1292_v17 = vpop.f32.mrb[36].mxu1 }
0x1409   :  { %v2919_v20 = vpop.f32.mrb[37].mxu1  ;;  %v1293_v22 = vadd.f32 %v2627_v16, %v1292_v17 }
0x140a   :  { %v1295_v21 = vpop.f32.mrb[38].mxu1 }
0x140b   :  { %v1296_v23 = vadd.f32 %v2627_v16, %v1295_v21  ;;  %v2920_v24 = vpop.f32.mrb[39].mxu1 }
0x140d   :  { %v3597_v25 = vpack.c.bf16 %v1296_v23, %v1293_v22 }
0x140f   :  { %1424 = vrot.lane.b32.xlu0 %v3597_v25, %s3237_s15  ;;  %1301 = vrot.lane.b32.xlu1 %v3597_v25, %s3236_s12 }
0x1413   :  { %1422 = vrot.lane.b32.xlu1 %v3597_v25, %s3239_s17 }
0x1481   :  { %v1302_v26 = vpop.permute.xlu1 %1301  ;;  %v1425_v27 = vpop.permute.xlu0 %1424 }
0x1482   :  { %v1307_v61 = vsel %vm286_vm4, %v1302_v26, 0  ;;  %v1430_v28 = vsel %vm286_vm4, %v1425_v27, 0 }
0x1483   :  { %2922 = vmatpush3.bf16.xpose.msra.mxu1 %v1307_v61 }
0x1484   :  { %2933 = vmatprep.subr.bf16.mxu1 %v3233_v0 }
0x1485   :  { %v1423_v30 = vpop.permute.xlu1 %1422 }
0x148a   :  { %2924 = vmatmul.mubr.msk.bf16.vlgmr.msra.gmra.mrb[40].mxu1 %vm286_vm4, %v3597_v25 }
0x148b   :  { %2934 = vmatpush3.bf16.xpose.msra.mxu1 %v1430_v28  ;;  %2935 = vmatprep.mubr.msk.bf16.mxu1 %vm3234_vm3, %v3233_v0 }
0x148c   :  { %2945 = vmatprep.subr.bf16.mxu1 %v3233_v0 }
0x1492   :  { %2936 = vmatmul.mubr.msk.bf16.vlgmr.msra.gmra.mrb[44].mxu1 %vm286_vm4, %v1423_v30  ;;  %v1600_v30 = vsel %vm537_vm8, %v1421_v7, 0 }
0x1493   :  { %2947 = vmatprep.mubr.msk.bf16.mxu1 %vm3234_vm3, %v3233_v0 }
0x155d   :  { %v1343_v2 = vpop.f32.mrb[40].mxu1 }
0x155e   :  { %v1344_v32 = vadd.f32 %v1343_v2, %v3400_v38  ;;  %v2925_v1 = vpop.f32.mrb[41].mxu1 }
0x155f   :  { %v1346_v33 = vpop.f32.mrb[42].mxu1 }
0x1560   :  { %v1347_v34 = vadd.f32 %v1346_v33, %v3402_v39  ;;  %v2926_v35 = vpop.f32.mrb[43].mxu1  ;;  %v1350_v36 = vsel %vm334_vm7, %v1344_v32, -inf }
0x1561   :  { %1351 = vmax.xlane.f32.xlu1 %v1350_v36 }
0x1562   :  { %v1353_v37 = vsel %vm334_vm7, %v1347_v34, -inf }
0x1563   :  { %1354 = vmax.xlane.f32.xlu0 %v1353_v37 }
0x1565   :  { %v1466_v40 = vpop.f32.mrb[44].mxu1 }
0x1566   :  { %v1467_v41 = vadd.f32 %v1466_v40, %v3400_v38  ;;  %v2937_v42 = vpop.f32.mrb[45].mxu1 }
0x1567   :  { %v1469_v43 = vpop.f32.mrb[46].mxu1 }
0x1568   :  { %v1470_v44 = vadd.f32 %v1469_v43, %v3402_v39  ;;  %v2938_v45 = vpop.f32.mrb[47].mxu1  ;;  %v1473_v46 = vsel %vm334_vm7, %v1467_v41, -inf }
0x1569   :  { %1474 = vmax.xlane.f32.xlu0 %v1473_v46 }
0x156a   :  { %v1476_v47 = vsel %vm334_vm7, %v1470_v44, -inf }
0x156b   :  { %1477 = vmax.xlane.f32.xlu1 %v1476_v47 }
0x15ee   :  { %v1352_v48 = vpop.xlane.xlu1 %1351 }
0x15ef   :  { %v1356_v18 = vsub.f32 %v1344_v32, %v1352_v48 }
0x15f0   :  { %v1355_v19 = vpop.xlane.xlu0 %1354 }
0x15f1   :  { %v1358_v49 = vmul.f32 1.442695, %v1356_v18  ;;  %v1357_v50 = vsub.f32 %v1347_v34, %v1355_v19 }
0x15f3   :  { %3177 = vpow2.f32 %v1358_v49  ;;  %v1360_v51 = vmul.f32 1.442695, %v1357_v50 }
0x15f5   :  { %3179 = vpow2.f32 %v1360_v51 }
0x15f6   :  { %v1475_v52 = vpop.xlane.xlu0 %1474 }
0x15f7   :  { %v1479_v53 = vsub.f32 %v1467_v41, %v1475_v52 }
0x15f8   :  { %v1478_v54 = vpop.xlane.xlu1 %1477 }
0x15f9   :  { %v1481_v55 = vmul.f32 1.442695, %v1479_v53  ;;  %v1480_v56 = vsub.f32 %v1470_v44, %v1478_v54 }
0x15fb   :  { %3181 = vpow2.f32 %v1481_v55  ;;  %v1483_v57 = vmul.f32 1.442695, %v1480_v56 }
0x15fd   :  { %v3178_v58 = vpop.eup %3177  ;;  %3183 = vpow2.f32 %v1483_v57 }
0x15fe   :  { %v1362_v59 = vsel %vm334_vm7, %v3178_v58, 0.0 }
0x15ff   :  { %v3180_v60 = vpop.eup %3179  ;;  %1363 = vadd.xlane.f32.xlu0 %v1362_v59 }
0x1600   :  { %v1365_v62 = vsel %vm334_vm7, %v3180_v60, 0.0 }
0x1601   :  { %1366 = vadd.xlane.f32.xlu1 %v1365_v62 }
0x1605   :  { %v3182_v63 = vpop.eup %3181 }
0x1606   :  { %v1485_v3 = vsel %vm334_vm7, %v3182_v63, 0.0 }
0x1607   :  { %v3184_v4 = vpop.eup %3183  ;;  %1486 = vadd.xlane.f32.xlu0 %v1485_v3 }
0x1608   :  { %v1488_v5 = vsel %vm334_vm7, %v3184_v4, 0.0 }
0x1609   :  { %1489 = vadd.xlane.f32.xlu1 %v1488_v5 }
0x161a   :  { %1496 = vrot.lane.b32.xlu1 %v3597_v25, %s3240_s18 }
0x161d   :  { %1373 = vrot.lane.b32.xlu0 %v3597_v25, %s3238_s16 }
0x161e   :  { %1547 = vrot.lane.b32.xlu1 %v3633_v29, %s3236_s12 }
0x1621   :  { %1645 = vrot.lane.b32.xlu0 %v3597_v25, %s3241_s19 }
0x1622   :  { %1643 = vrot.lane.b32.xlu1 %v3597_v25, %s3242_s20 }
0x168c   :  { %v1364_v6 = vpop.xlane.xlu0 %1363 }
0x168d   :  { %3185 = vrcp.f32 %v1364_v6 }
0x168e   :  { %v1367_v8 = vpop.xlane.xlu1 %1366 }
0x168f   :  { %3187 = vrcp.f32 %v1367_v8 }
0x1694   :  { %v1487_v9 = vpop.xlane.xlu0 %1486 }
0x1695   :  { %3189 = vrcp.f32 %v1487_v9 }
0x1696   :  { %v1490_v10 = vpop.xlane.xlu1 %1489 }
0x1697   :  { %v3186_v11 = vpop.eup %3185  ;;  %3191 = vrcp.f32 %v1490_v10 }
0x1698   :  { %v1374_v12 = vpop.permute.xlu0 %1373  ;;  %v1370_v16 = vmul.f32 %v3186_v11, %v3178_v58 }
0x1699   :  { %v3188_v15 = vpop.eup %3187  ;;  %2928 = vmatpush3.bf16.msra.mxu0 %v1374_v12 }
0x169a   :  { %v1371_v17 = vmul.f32 %v3188_v15, %v3180_v60  ;;  %v1497_v20 = vpop.permute.xlu1 %1496  ;;  %2939 = vmatprep.subr.bf16.mxu0 %v3233_v0 }
0x169c   :  { %v1372_v21 = vpack.c.bf16 %v1371_v17, %v1370_v16  ;;  %v1646_v37 = vpop.permute.xlu0 %1645 }
0x169d   :  { %v1651_v43 = vsel %vm286_vm4, %v1646_v37, 0 }
0x169e   :  { %2930 = vmatmul.mubr.msk.bf16.vlgmr.msra.gmra.mrb[28].mxu0 %vm334_vm7, %v1372_v21  ;;  %v1548_v22 = vpop.permute.xlu1 %1547 }
0x169f   :  { %v3190_v23 = vpop.eup %3189  ;;  %2940 = vmatpush3.bf16.msra.mxu0 %v1497_v20  ;;  %v1553_v24 = vsel %vm537_vm8, %v1548_v22, 0  ;;  %2941 = vmatprep.mubr.msk.bf16.mxu0 %vm3234_vm3, %v3233_v0 }
0x16a0   :  { %2951 = vmatprep.subr.bf16.mxu0 %v3233_v0  ;;  %2946 = vmatpush3.bf16.msra.mxu1 %v1553_v24  ;;  %v1493_v61 = vmul.f32 %v3190_v23, %v3182_v63 }
0x16a1   :  { %v3192_v26 = vpop.eup %3191  ;;  %2957 = vmatprep.subr.bf16.mxu1 %v3233_v0 }
0x16a2   :  { %v1494_v27 = vmul.f32 %v3192_v26, %v3184_v4  ;;  %v1644_v44 = vpop.permute.xlu1 %1643 }
0x16a4   :  { %v1495_v28 = vpack.c.bf16 %v1494_v27, %v1493_v61 }
0x16a6   :  { %2942 = vmatmul.mubr.msk.bf16.vlgmr.msra.gmra.mrb[32].mxu0 %vm334_vm7, %v1495_v28 }
0x16a7   :  { %2953 = vmatprep.mubr.msk.bf16.mxu0 %vm3234_vm3, %v3233_v0  ;;  %2952 = vmatpush3.bf16.msra.mxu0 %v1600_v30 }
0x16a8   :  { %2963 = vmatprep.subr.bf16.mxu0 %v3233_v0 }
0x1771   :  { %v1413_v2 = vpop.f32.mrb[28].mxu0 }
0x1772   :  { %v2931_v32 = vpop.f32.mrb[29].mxu0 }
0x1773   :  { %v1416_v1 = vpop.f32.mrb[30].mxu0 }
0x1774   :  { %v1420_v33 = vpack.c.bf16 %v1416_v1, %v1413_v2  ;;  %v2932_v34 = vpop.f32.mrb[31].mxu0 }
0x1776   :  { %2954 = vmatmul.mubr.msk.bf16.vlgmr.msra.gmra.mrb[36].mxu0 %vm286_vm4, %v1420_v33 }
0x1777   :  { %2965 = vmatprep.mubr.msk.bf16.mxu0 %vm3234_vm3, %v3233_v0 }
0x1779   :  { %v1536_v35 = vpop.f32.mrb[32].mxu0 }
0x177a   :  { %v2943_v36 = vpop.f32.mrb[33].mxu0 }
0x177b   :  { %v1539_v40 = vpop.f32.mrb[34].mxu0 }
0x177c   :  { %v1543_v41 = vpack.c.bf16 %v1539_v40, %v1536_v35  ;;  %v2944_v42 = vpop.f32.mrb[35].mxu0 }
0x177e   :  { %2948 = vmatmul.mubr.msk.bf16.vlgmr.msra.gmra.mrb[48].mxu1 %vm286_vm4, %v1543_v41 }
0x177f   :  { %2958 = vmatpush3.bf16.xpose.msra.mxu1 %v1651_v43  ;;  %2959 = vmatprep.mubr.msk.bf16.mxu1 %vm3234_vm3, %v3233_v0 }
0x1780   :  { %2969 = vmatprep.subr.bf16.mxu1 %v3233_v0 }
0x1786   :  { %2960 = vmatmul.mubr.msk.bf16.vlgmr.msra.gmra.mrb[52].mxu1 %vm286_vm4, %v1644_v44 }
0x1787   :  { %2971 = vmatprep.mubr.msk.bf16.mxu1 %vm3234_vm3, %v3233_v0 }
0x1849   :  { %v1636_v45 = vpop.f32.mrb[36].mxu0 }
0x184a   :  { %v2955_v46 = vpop.f32.mrb[37].mxu0 }
0x184b   :  { %v1639_v47 = vpop.f32.mrb[38].mxu0 }
0x184c   :  { %v2956_v48 = vpop.f32.mrb[39].mxu0 }
0x1851   :  { %v1589_v18 = vpop.f32.mrb[48].mxu1 }
0x1852   :  { %v3666_v19 = vadd.f32 %v1636_v45, %v1589_v18  ;;  %v2949_v49 = vpop.f32.mrb[49].mxu1 }
0x1853   :  { %v1592_v50 = vpop.f32.mrb[50].mxu1 }
0x1854   :  { %v3668_v51 = vadd.f32 %v1639_v47, %v1592_v50  ;;  %v2950_v52 = vpop.f32.mrb[51].mxu1 }
0x1859   :  { %v1687_v53 = vpop.f32.mrb[52].mxu1 }
0x185a   :  { %v1688_v54 = vadd.f32 %v1687_v53, %v3400_v38  ;;  %v2961_v55 = vpop.f32.mrb[53].mxu1 }
0x185b   :  { %v1690_v56 = vpop.f32.mrb[54].mxu1 }
0x185c   :  { %v1691_v57 = vadd.f32 %v1690_v56, %v3402_v39  ;;  %v2962_v58 = vpop.f32.mrb[55].mxu1  ;;  %v1694_v59 = vsel %vm334_vm7, %v1688_v54, -inf }
0x185d   :  { %1695 = vmax.xlane.f32.xlu0 %v1694_v59 }
0x185e   :  { %v1697_v60 = vsel %vm334_vm7, %v1691_v57, -inf }
0x185f   :  { %1698 = vmax.xlane.f32.xlu1 %v1697_v60 }
0x1870   :  { %1717 = vrot.lane.b32.xlu1 %v3597_v25, %s3243_s23 }
0x1874   :  { %1816 = vrot.lane.b32.xlu1 %v3597_v25, %s3244_s24 }
0x18ea   :  { %v1696_v62 = vpop.xlane.xlu0 %1695 }
0x18eb   :  { %v1700_v63 = vsub.f32 %v1688_v54, %v1696_v62 }
0x18ec   :  { %v1699_v3 = vpop.xlane.xlu1 %1698 }
0x18ed   :  { %v1702_v4 = vmul.f32 1.442695, %v1700_v63  ;;  %v1701_v5 = vsub.f32 %v1691_v57, %v1699_v3 }
0x18ef   :  { %3193 = vpow2.f32 %v1702_v4  ;;  %v1704_v7 = vmul.f32 1.442695, %v1701_v5 }
0x18f0   :  { %v1718_v6 = vpop.permute.xlu1 %1717 }
0x18f1   :  { %3195 = vpow2.f32 %v1704_v7  ;;  %2964 = vmatpush3.bf16.msra.mxu0 %v1718_v6 }
0x18f2   :  { %2975 = vmatprep.subr.bf16.mxu0 %v3233_v0 }
0x18f4   :  { %v1817_v26 = vpop.permute.xlu1 %1816 }
0x18f9   :  { %v3194_v8 = vpop.eup %3193 }
0x18fa   :  { %v1706_v9 = vsel %vm334_vm7, %v3194_v8, 0.0 }
0x18fb   :  { %v3196_v10 = vpop.eup %3195  ;;  %1707 = vadd.xlane.f32.xlu0 %v1706_v9 }
0x18fc   :  { %v1709_v11 = vsel %vm334_vm7, %v3196_v10, 0.0 }
0x18ff   :  { %1710 = vadd.xlane.f32.xlu0 %v1709_v11 }
0x1915   :  { %1818 = vrot.lane.b32.xlu0 %v3597_v25, %s3245_s25 }
0x1988   :  { %v1708_v12 = vpop.xlane.xlu0 %1707 }
0x1989   :  { %3197 = vrcp.f32 %v1708_v12 }
0x198c   :  { %v1711_v15 = vpop.xlane.xlu0 %1710 }
0x198d   :  { %3199 = vrcp.f32 %v1711_v15 }
0x1990   :  { %v1819_v22 = vpop.permute.xlu0 %1818 }
0x1991   :  { %v1824_v24 = vsel %vm286_vm4, %v1819_v22, 0 }
0x1993   :  { %v3198_v16 = vpop.eup %3197 }
0x1994   :  { %v1714_v20 = vmul.f32 %v3198_v16, %v3194_v8 }
0x1997   :  { %v3200_v17 = vpop.eup %3199 }
0x1998   :  { %v1715_v21 = vmul.f32 %v3200_v17, %v3196_v10 }
0x199a   :  { %v1716_v23 = vpack.c.bf16 %v1715_v21, %v1714_v20 }
0x199c   :  { %2966 = vmatmul.mubr.msk.bf16.vlgmr.msra.gmra.mrb[40].mxu0 %vm334_vm7, %v1716_v23 }
0x199d   :  { %2976 = vmatpush3.bf16.xpose.msra.mxu0 %v1824_v24  ;;  %2977 = vmatprep.mubr.msk.bf16.mxu0 %vm3234_vm3, %v3233_v0 }
0x199e   :  { %2987 = vmatprep.subr.bf16.mxu0 %v3233_v0 }
0x19a4   :  { %2978 = vmatmul.mubr.msk.bf16.vlgmr.msra.gmra.mrb[44].mxu0 %vm286_vm4, %v1817_v26 }
0x19a5   :  { %2989 = vmatprep.mubr.msk.bf16.mxu0 %vm3234_vm3, %v3233_v0 }
0x1a6f   :  { %v1757_v61 = vpop.f32.mrb[40].mxu0 }
0x1a70   :  { %v2967_v27 = vpop.f32.mrb[41].mxu0 }
0x1a71   :  { %v1760_v28 = vpop.f32.mrb[42].mxu0 }
0x1a72   :  { %v1764_v30 = vpack.c.bf16 %v1760_v28, %v1757_v61  ;;  %v2968_v2 = vpop.f32.mrb[43].mxu0 }
0x1a77   :  { %v1860_v32 = vpop.f32.mrb[44].mxu0 }
0x1a78   :  { %v1861_v1 = vadd.f32 %v1860_v32, %v3400_v38  ;;  %v2979_v33 = vpop.f32.mrb[45].mxu0 }
0x1a79   :  { %v1863_v34 = vpop.f32.mrb[46].mxu0 }
0x1a7a   :  { %v1864_v35 = vadd.f32 %v1863_v34, %v3402_v39  ;;  %v2980_v36 = vpop.f32.mrb[47].mxu0  ;;  %v1867_v37 = vsel %vm334_vm7, %v1861_v1, -inf  ;;  %v3118_v34 = vld [vmem:[%s3844_s1 + $0x68] sm:$0xff]  }
0x1a7b   :  { %1868 = vmax.xlane.f32.xlu1 %v1867_v37 }
0x1a7c   :  { %v1870_v40 = vsel %vm334_vm7, %v1864_v35, -inf }
0x1a7d   :  { %1871 = vmax.xlane.f32.xlu0 %v1870_v40 }
0x1b08   :  { %v1869_v41 = vpop.xlane.xlu1 %1868 }
0x1b09   :  { %v1873_v42 = vsub.f32 %v1861_v1, %v1869_v41 }
0x1b0a   :  { %v1872_v43 = vpop.xlane.xlu0 %1871 }
0x1b0b   :  { %v1875_v44 = vmul.f32 1.442695, %v1873_v42  ;;  %v1874_v45 = vsub.f32 %v1864_v35, %v1872_v43 }
0x1b0d   :  { %3201 = vpow2.f32 %v1875_v44  ;;  %v1877_v46 = vmul.f32 1.442695, %v1874_v45  ;;  %v2645_v45 = vld [vmem:[%s3843_s2 + $0xa2] ss:$0 sm:$0xff] }
0x1b0f   :  { %3203 = vpow2.f32 %v1877_v46 }
0x1b17   :  { %v3202_v38 = vpop.eup %3201 }
0x1b18   :  { %v1879_v47 = vsel %vm334_vm7, %v3202_v38, 0.0 }
0x1b19   :  { %v3204_v48 = vpop.eup %3203  ;;  %1880 = vadd.xlane.f32.xlu0 %v1879_v47 }
0x1b1a   :  { %v1882_v39 = vsel %vm334_vm7, %v3204_v48, 0.0 }
0x1b1b   :  { %1883 = vadd.xlane.f32.xlu1 %v1882_v39 }
0x1b2c   :  { %1890 = vrot.lane.b32.xlu1 %v3597_v25, %s3246_s26 }
0x1b2f   :  { %1765 = vrot.lane.b32.xlu0 %v3633_v29, %s3238_s16 }
0x1b30   :  { %1938 = vrot.lane.b32.xlu1 %v3633_v29, %s3247_s27 }
0x1ba6   :  { %v1881_v18 = vpop.xlane.xlu0 %1880 }
0x1ba7   :  { %3205 = vrcp.f32 %v1881_v18 }
0x1ba8   :  { %v1884_v49 = vpop.xlane.xlu1 %1883 }
0x1ba9   :  { %3207 = vrcp.f32 %v1884_v49 }
0x1baa   :  { %v1766_v50 = vpop.permute.xlu0 %1765 }
0x1bab   :  { %v1771_v52 = vsel %vm537_vm8, %v1766_v50, 0 }
0x1bac   :  { %2970 = vmatpush3.bf16.msra.mxu1 %v1771_v52  ;;  %v1891_v53 = vpop.permute.xlu1 %1890  ;;  %v3119_v52 = vld [vmem:[%s3844_s1 + $0x70] sm:$0xff]  }
0x1bad   :  { %2981 = vmatprep.subr.bf16.mxu1 %v3233_v0 }
0x1baf   :  { %2972 = vmatmul.mubr.msk.bf16.vlgmr.msra.gmra.mrb[56].mxu1 %vm286_vm4, %v1764_v30 }
0x1bb0   :  { %2982 = vmatpush3.bf16.msra.mxu1 %v1891_v53  ;;  %2983 = vmatprep.mubr.msk.bf16.mxu1 %vm3234_vm3, %v3233_v0  ;;  %v1939_v57 = vpop.permute.xlu1 %1938  ;;  %v3120_v53 = vld [vmem:[%s3844_s1 + $0x78] sm:$0xff]  }
0x1bb1   :  { %v3206_v25 = vpop.eup %3205  ;;  %2993 = vmatprep.subr.bf16.mxu1 %v3233_v0  ;;  %v1944_v58 = vsel %vm537_vm8, %v1939_v57, 0 }
0x1bb2   :  { %v1887_v54 = vmul.f32 %v3206_v25, %v3202_v38  ;;  %2988 = vmatpush3.bf16.msra.mxu0 %v1944_v58  ;;  %v3121_v25 = vld [vmem:[%s3844_s1 + $0x80] sm:$0xff]  }
0x1bb3   :  { %v3208_v29 = vpop.eup %3207  ;;  %3001 = vmatprep.subr.bf16.mxu0 %v3233_v0 }
0x1bb4   :  { %v1888_v55 = vmul.f32 %v3208_v29, %v3204_v48  ;;  %v2646_v48 = vld [vmem:[%s3843_s2 + $0xa3] ss:$0 sm:$0xff]  ;;  %v3122_v29 = vld [vmem:[%s3844_s1 + $0x88] sm:$0xff]  }
0x1bb6   :  { %v1889_v56 = vpack.c.bf16 %v1888_v55, %v1887_v54  ;;  %v2647_v54 = vld [vmem:[%s3843_s2 + $0xa4] ss:$0 sm:$0xff] }
0x1bb8   :  { %2984 = vmatmul.mubr.msk.bf16.vlgmr.msra.gmra.mrb[60].mxu1 %vm334_vm7, %v1889_v56 }
0x1bb9   :  { %2997 = vmatprep.mubr.msk.bf16.mxu1 %vm3234_vm3, %v3233_v0 }
0x1c82   :  { %v1807_v59 = vpop.f32.mrb[56].mxu1 }
0x1c83   :  { %v1814_v60 = vadd.f32 %v1807_v59, %v3666_v19  ;;  %v2973_v62 = vpop.f32.mrb[57].mxu1  ;;  %v2644_v19 = vld [vmem:[%s3843_s2 + $0xa1] ss:$0 sm:$0xff] }
0x1c84   :  { %v1810_v63 = vpop.f32.mrb[58].mxu1 }
0x1c85   :  { %v1815_v3 = vadd.f32 %v1810_v63, %v3668_v51  ;;  %v2974_v4 = vpop.f32.mrb[59].mxu1 }
0x1c8b   :  { %v1930_v5 = vpop.f32.mrb[60].mxu1 }
0x1c8c   :  { %v2985_v7 = vpop.f32.mrb[61].mxu1 }
0x1c8d   :  { %v1933_v6 = vpop.f32.mrb[62].mxu1 }
0x1c8e   :  { %v1937_v8 = vpack.c.bf16 %v1933_v6, %v1930_v5  ;;  %v2986_v9 = vpop.f32.mrb[63].mxu1 }
0x1c90   :  { %2990 = vmatmul.mubr.msk.bf16.vlgmr.msra.gmra.mrb[48].mxu0 %vm286_vm4, %v1937_v8 }
0x1c91   :  { %3009 = vmatprep.mubr.msk.bf16.mxu0 %vm3234_vm3, %v3233_v0  ;;  %3002 = vmatpush3.bf16.msra.mxu0 %v3119_v52 }
0x1c92   :  { %3003 = vmatprep.subr.bf16.mxu0 %v3233_v0 }
0x1c95   :  { %3004 = vmatpush3.bf16.msra.mxu0 %v3120_v53  ;;  %v2657_v53 = vld [vmem:[%s3843_s2 + $0xa6] ss:$0 sm:$0xff] }
0x1c96   :  { %3005 = vmatprep.subr.bf16.mxu0 %v3233_v0 }
0x1c99   :  { %3006 = vmatpush3.bf16.msra.mxu0 %v3121_v25 }
0x1c9a   :  { %3007 = vmatprep.subr.bf16.mxu0 %v3233_v0 }
0x1c9d   :  { %3008 = vmatpush3.bf16.msra.mxu0 %v3122_v29 }
0x1c9e   :  { %3028 = vmatprep.subr.bf16.mxu0 %v3233_v0 }
0x1d63   :  { %v1980_v10 = vpop.f32.mrb[48].mxu0 }
0x1d64   :  { %v1987_v11 = vadd.f32 %v1980_v10, %v1814_v60  ;;  %v2991_v12 = vpop.f32.mrb[49].mxu0 }
0x1d65   :  { %v1983_v15 = vpop.f32.mrb[50].mxu0 }
0x1d66   :  { %v1994_v51 = vadd.f32 %v2644_v19, %v1987_v11  ;;  %v1988_v16 = vadd.f32 %v1983_v15, %v1815_v3  ;;  %v2992_v17 = vpop.f32.mrb[51].mxu0 }
0x1d68   :  { %v1995_v20 = vadd.f32 %v2644_v19, %v1988_v16  ;;  %v1996_v21 = vadd.f32 %v1994_v51, %v3585_v13 }
0x1d6a   :  { %v2000_v22 = vsel %vm156_vm2, %v1996_v21, 0.0  ;;  %v1997_v23 = vadd.f32 %v1995_v20, %v3587_v14  ;;  %v3117_v14 = vld [vmem:[%s3844_s1 + $0x60] sm:$0xff]  }
0x1d6b   :  { %2001 = vadd.xlane.f32.xlu0 %v2000_v22  ;;  %2994 = vmatpush3.bf16.msra.mxu1 %v3117_v14  ;;  %v2651_v22 = vld [vmem:[%s3843_s2 + $0xa5] ss:$0 sm:$0xff] }
0x1d6c   :  { %v2003_v24 = vsel %vm156_vm2, %v1997_v23, 0.0  ;;  %2995 = vmatprep.subr.bf16.mxu1 %v3233_v0 }
0x1d6d   :  { %2004 = vadd.xlane.f32.xlu1 %v2003_v24 }
0x1d6f   :  { %2996 = vmatpush3.bf16.msra.mxu1 %v3118_v34 }
0x1df8   :  { %v2002_v26 = vpop.xlane.xlu0 %2001 }
0x1df9   :  { %v2006_v61 = vmul.f32 0.03125, %v2002_v26 }
0x1dfa   :  { %v2005_v27 = vpop.xlane.xlu1 %2004 }
0x1dfb   :  { %v2008_v28 = vsub.f32 %v1996_v21, %v2006_v61  ;;  %v2007_v30 = vmul.f32 0.03125, %v2005_v27 }
0x1dfd   :  { %v2009_v2 = vsub.f32 %v1997_v23, %v2007_v30  ;;  %v2010_v32 = vmul.f32 %v2008_v28, %v2008_v28 }
0x1dff   :  { %v2012_v1 = vsel %vm156_vm2, %v2010_v32, 0.0  ;;  %v2011_v33 = vmul.f32 %v2009_v2, %v2009_v2 }
0x1e00   :  { %2013 = vadd.xlane.f32.xlu0 %v2012_v1 }
0x1e01   :  { %v2015_v13 = vsel %vm156_vm2, %v2011_v33, 0.0  ;;  %v3248_v33 = vmov 3  }
0x1e02   :  { %3103 = vset.pattern.permute.xlu1 %v3248_v33  ;;  %3104 = vset.pattern.permute.xlu0 %v3248_v33 }
0x1e04   :  { %2016 = vadd.xlane.f32.xlu0 %v2015_v13 }
0x1e8d   :  { %v2014_v35 = vpop.xlane.xlu0 %2013 }
0x1e8e   :  { %v2018_v36 = vmul.f32 0.03125, %v2014_v35 }
0x1e90   :  { %v2020_v37 = vadd.f32 1e-12, %v2018_v36 }
0x1e91   :  { %v2017_v40 = vpop.xlane.xlu0 %2016 }
0x1e92   :  { %3209 = vrsqrt.f32 %v2020_v37  ;;  %v2019_v41 = vmul.f32 0.03125, %v2017_v40 }
0x1e94   :  { %v2021_v42 = vadd.f32 1e-12, %v2019_v41 }
0x1e96   :  { %3211 = vrsqrt.f32 %v2021_v42 }
0x1e9c   :  { %v3210_v43 = vpop.eup %3209 }
0x1e9d   :  { %v2024_v44 = vmul.f32 %v3210_v43, %v2008_v28 }
0x1e9f   :  { %v2030_v38 = vmul.f32 %v2645_v45, %v2024_v44  ;;  %v3229_v44 = vld [vmem:[%s3842_s0] sm:$0xff] }
0x1ea0   :  { %v3212_v46 = vpop.eup %3211 }
0x1ea1   :  { %v2025_v47 = vmul.f32 %v3212_v46, %v2009_v2  ;;  %v2036_v18 = vadd.f32 %v2646_v48, %v2030_v38 }
0x1ea3   :  { %v2031_v39 = vmul.f32 %v2645_v45, %v2025_v47  ;;  %v19_v45 = vld [vmem:[%s3842_s0 + $0x8] sm:$0x3] }
0x1ea5   :  { %v2037_v49 = vadd.f32 %v2646_v48, %v2031_v39 }
0x1ea7   :  { %v2038_v50 = vpack.c.bf16 %v2037_v49, %v2036_v18 }
0x1ea9   :  { %2998 = vmatmul.mubr.msk.bf16.vlgmr.msra.gmra.mrb[64].mxu1 %vm156_vm2, %v2038_v50 }
0x1f7c   :  { %v2097_v55 = vpop.f32.mrb[64].mxu1 }
0x1f7d   :  { %v2098_v56 = vadd.f32 %v2647_v54, %v2097_v55  ;;  %v2999_v57 = vpop.f32.mrb[65].mxu1 }
0x1f7e   :  { %v2100_v58 = vpop.f32.mrb[66].mxu1 }
0x1f7f   :  { %v2106_v59 = vmul.f32 0.044715, %v2098_v56  ;;  %v2101_v60 = vadd.f32 %v2647_v54, %v2100_v58  ;;  %v3000_v62 = vpop.f32.mrb[67].mxu1  ;;  %v2104_v15 = vmul.f32 0.5, %v2098_v56 }
0x1f81   :  { %v2108_v63 = vmul.f32 %v2106_v59, %v2098_v56  ;;  %v2107_v3 = vmul.f32 0.044715, %v2101_v60  ;;  %v2105_v51 = vmul.f32 0.5, %v2101_v60 }
0x1f83   :  { %v2110_v4 = vmul.f32 %v2108_v63, %v2098_v56  ;;  %v2109_v5 = vmul.f32 %v2107_v3, %v2101_v60  ;;  %v3123_v3 = vld [vmem:[%s3844_s1 + $0x90] sm:$0xff]  }
0x1f85   :  { %v2112_v7 = vadd.f32 %v2110_v4, %v2098_v56  ;;  %v2111_v6 = vmul.f32 %v2109_v5, %v2101_v60  ;;  %v2658_v56 = vld [vmem:[%s3843_s2 + $0xa7] ss:$0 sm:$0xff] }
0x1f87   :  { %v2114_v8 = vmul.f32 0.7978846, %v2112_v7  ;;  %v2113_v9 = vadd.f32 %v2111_v6, %v2101_v60  ;;  %v3125_v7 = vld [vmem:[%s3844_s1 + $0xa0] sm:$0xff]  }
0x1f89   :  { %3213 = vtanh.f32 %v2114_v8  ;;  %v2115_v10 = vmul.f32 0.7978846, %v2113_v9  ;;  %v3126_v8 = vld [vmem:[%s3844_s1 + $0xa8] sm:$0xff]  }
0x1f8b   :  { %3215 = vtanh.f32 %v2115_v10  ;;  %v2663_v10 = vld [vmem:[%s3843_s2 + $0xa8] ss:$0 sm:$0xff] }
0x1f93   :  { %v3214_v19 = vpop.eup %3213 }
0x1f94   :  { %v2118_v11 = vadd.f32 1.0, %v3214_v19 }
0x1f95   :  { %v3216_v12 = vpop.eup %3215 }
0x1f96   :  { %v2119_v16 = vadd.f32 1.0, %v3216_v12  ;;  %v2120_v17 = vmul.f32 %v2118_v11, %v2104_v15 }
0x1f98   :  { %v2121_v20 = vmul.f32 %v2119_v16, %v2105_v51 }
0x1f9a   :  { %v2122_v21 = vpack.c.bf16 %v2121_v20, %v2120_v17  ;;  %v2673_v20 = vld [vmem:[%s3843_s2 + $0xac] ss:$0 sm:$0xff] }
0x1f9c   :  { %3010 = vmatmul.mubr.msk.bf16.vlgmr.msra.gmra.mrb[52].mxu0 %vm1146_vm9, %v2122_v21 }
0x1f9d   :  { %3032 = vmatprep.mubr.msk.bf16.mxu0 %vm3234_vm3, %v3233_v0 }
0x206f   :  { %v2197_v23 = vpop.f32.mrb[52].mxu0 }
0x2070   :  { %v2198_v24 = vadd.f32 %v2651_v22, %v2197_v23  ;;  %v3011_v26 = vpop.f32.mrb[53].mxu0 }
0x2071   :  { %v2200_v61 = vpop.f32.mrb[54].mxu0 }
0x2072   :  { %v2201_v27 = vadd.f32 %v2651_v22, %v2200_v61  ;;  %v3012_v28 = vpop.f32.mrb[55].mxu0  ;;  %v2204_v30 = vadd.f32 %v2198_v24, %v2036_v18 }
0x2074   :  { %v2208_v2 = vsel %vm156_vm2, %v2204_v30, 0.0  ;;  %v2205_v32 = vadd.f32 %v2201_v27, %v2037_v49 }
0x2075   :  { %2209 = vadd.xlane.f32.xlu1 %v2208_v2 }
0x2076   :  { %v2211_v1 = vsel %vm156_vm2, %v2205_v32, 0.0 }
0x2077   :  { %2212 = vadd.xlane.f32.xlu0 %v2211_v1 }
0x2102   :  { %v2210_v13 = vpop.xlane.xlu1 %2209 }
0x2103   :  { %v2214_v14 = vmul.f32 0.03125, %v2210_v13 }
0x2104   :  { %v2213_v34 = vpop.xlane.xlu0 %2212 }
0x2105   :  { %v2216_v35 = vsub.f32 %v2204_v30, %v2214_v14  ;;  %v2215_v36 = vmul.f32 0.03125, %v2213_v34 }
0x2107   :  { %v2217_v37 = vsub.f32 %v2205_v32, %v2215_v36  ;;  %v2218_v40 = vmul.f32 %v2216_v35, %v2216_v35 }
0x2109   :  { %v2220_v41 = vsel %vm156_vm2, %v2218_v40, 0.0  ;;  %v2219_v42 = vmul.f32 %v2217_v37, %v2217_v37  ;;  %v3128_v40 = vld [vmem:[%s3844_s1 + $0xb8] sm:$0xff]  }
0x210a   :  { %2221 = vadd.xlane.f32.xlu1 %v2220_v41 }
0x210b   :  { %v2223_v43 = vsel %vm156_vm2, %v2219_v42, 0.0 }
0x210c   :  { %2224 = vadd.xlane.f32.xlu0 %v2223_v43 }
0x211b   :  { %2247 = vperm.xlu1 %3103, %v3229_v44  }
0x2122   :  { %2250 = vperm.xlu0 %3104, %v19_v45   ;;  %v2667_v45 = vld [vmem:[%s3843_s2 + $0xa9] ss:$0 sm:$0xff] }
0x2197   :  { %v2222_v46 = vpop.xlane.xlu1 %2221 }
0x2198   :  { %v2226_v38 = vmul.f32 0.03125, %v2222_v46 }
0x2199   :  { %v2225_v47 = vpop.xlane.xlu0 %2224 }
0x219a   :  { %v2228_v48 = vadd.f32 1e-12, %v2226_v38  ;;  %v2227_v39 = vmul.f32 0.03125, %v2225_v47  ;;  %v2668_v38 = vld [vmem:[%s3843_s2 + $0xaa] ss:$0 sm:$0xff] }
0x219b   :  { %v2248_v18 = vpop.permute.xlu1 %2247 }
0x219c   :  { %3217 = vrsqrt.f32 %v2228_v48  ;;  %v2229_v49 = vadd.f32 1e-12, %v2227_v39  ;;  %vm2252_vm10 = vcmp.eq.s32.totalorder %v2248_v18, %v3331_v31 }
0x219d   :  { %v2659_v50 = vsel %vm2252_vm10, 1.0, %v3233_v0 }
0x219e   :  { %3219 = vrsqrt.f32 %v2229_v49  ;;  %3017 = vmatprep.mubr.msk.f32.mxu1 %vm334_vm7, %v2659_v50 }
0x21a1   :  { %v2251_v58 = vpop.permute.xlu0 %2250 }
0x21a2   :  { %vm2253_vm11 = vcmp.eq.s32.totalorder %v2251_v58, %v3331_v31  ;;  %v3124_v31 = vld [vmem:[%s3844_s1 + $0x98] sm:$0xff]  }
0x21a3   :  { %v2660_v63 = vsel %vm2253_vm11, 1.0, %v3233_v0 }
0x21a6   :  { %v3218_v52 = vpop.eup %3217 }
0x21a7   :  { %v2232_v25 = vmul.f32 %v3218_v52, %v2216_v35 }
0x21a8   :  { %v3220_v29 = vpop.eup %3219 }
0x21a9   :  { %v2233_v54 = vmul.f32 %v3220_v29, %v2217_v37  ;;  %v2238_v55 = vmul.f32 %v2657_v53, %v2232_v25  ;;  %v3127_v37 = vld [vmem:[%s3844_s1 + $0xb0] sm:$0xff]  }
0x21aa   :  { %3029 = vmatpush3.bf16.msra.mxu0 %v3127_v37 }
0x21ab   :  { %v2239_v57 = vmul.f32 %v2657_v53, %v2233_v54  ;;  %v2244_v59 = vadd.f32 %v2658_v56, %v2238_v55  ;;  %3030 = vmatprep.subr.bf16.mxu0 %v3233_v0 }
0x21ad   :  { %v2245_v60 = vadd.f32 %v2658_v56, %v2239_v57 }
0x21ae   :  { %3031 = vmatpush3.bf16.msra.mxu0 %v3128_v40 }
0x21af   :  { %v3076_v62 = vpack.c.bf16 %v2245_v60, %v2244_v59 }
0x21b1   :  { %3077 = vmatprep.subr.bf16.mxu1 %v3076_v62 }
0x21b2   :  { %3079 = vmatpush3.bf16.msra.mxu1 %v3076_v62 }
0x21b3   :  { %3020 = vmatprep.subr.bf16.mxu1 %v3233_v0 }
0x21b5   :  { %3018 = vmatmul.mubr.msk.f32.vlgmr.msra.gmra.mrb[68].mxu1 %vm334_vm7, %v2660_v63 }
0x21b6   :  { %3021 = vmatpush3.bf16.msra.mxu1 %v3123_v3  ;;  %3024 = vmatprep.mubr.msk.bf16.mxu1 %vm3234_vm3, %v3233_v0 }
0x21b7   :  { %3022 = vmatprep.subr.bf16.mxu1 %v3233_v0 }
0x21ba   :  { %3023 = vmatpush3.bf16.msra.mxu1 %v3124_v31 }
0x21bb   :  { %3036 = vmatprep.subr.bf16.mxu1 %v3233_v0 }
0x2288   :  { %v3019_v4 = vpop.f32.mrb[68].mxu1 }
0x2289   :  { %v2330_v5 = vpop.f32.mrb[69].mxu1  ;;  %v2514_v9 = vpack.c.bf16 %v3019_v4, %v3019_v4 }
0x228a   :  { %v2339_v6 = vpack.c.bf16 %v2330_v5, %v2330_v5 }
0x228c   :  { %3025 = vmatmul.mubr.msk.bf16.vlgmr.msra.gmra.mrb[72].mxu1 %vm156_vm2, %v2339_v6 }
0x228d   :  { %3037 = vmatpush3.bf16.msra.mxu1 %v3125_v7  ;;  %3040 = vmatprep.mubr.msk.bf16.mxu1 %vm3234_vm3, %v3233_v0 }
0x228e   :  { %3038 = vmatprep.subr.bf16.mxu1 %v3233_v0  ;;  %v2669_v0 = vld [vmem:[%s3843_s2 + $0xab] ss:$0 sm:$0xff] }
0x2291   :  { %3039 = vmatpush3.bf16.msra.mxu1 %v3126_v8 }
0x2294   :  { %3041 = vmatmul.mubr.msk.bf16.vlgmr.msra.gmra.mrb[76].mxu1 %vm156_vm2, %v2514_v9 }
0x235f   :  { %v2398_v19 = vpop.f32.mrb[72].mxu1 }
0x2360   :  { %v2399_v11 = vadd.f32 %v2663_v10, %v2398_v19  ;;  %v3026_v12 = vpop.f32.mrb[73].mxu1 }
0x2361   :  { %v2401_v15 = vpop.f32.mrb[74].mxu1 }
0x2362   :  { %v2405_v51 = vmul.f32 0.044715, %v2399_v11  ;;  %v3027_v16 = vpop.f32.mrb[75].mxu1  ;;  %v2404_v2 = vmul.f32 0.5, %v2399_v11 }
0x2364   :  { %v2406_v17 = vmul.f32 %v2405_v51, %v2399_v11 }
0x2366   :  { %v2407_v21 = vmul.f32 %v2406_v17, %v2399_v11 }
0x2367   :  { %v2573_v22 = vpop.f32.mrb[76].mxu1 }
0x2368   :  { %v2574_v23 = vadd.f32 %v2673_v20, %v2573_v22  ;;  %v3042_v24 = vpop.f32.mrb[77].mxu1  ;;  %v2408_v26 = vadd.f32 %v2407_v21, %v2399_v11 }
0x2369   :  { %v2576_v61 = vpop.f32.mrb[78].mxu1 }
0x236a   :  { %2579 = vst [vmem:[%s3845_s3 + $0x8] sm:$0x3] %v2574_v23  ;;  %v3043_v27 = vpop.f32.mrb[79].mxu1  ;;  %v2409_v28 = vmul.f32 0.7978846, %v2408_v26 }
0x236c   :  { %3221 = vtanh.f32 %v2409_v28 }
0x2376   :  { %v3222_v30 = vpop.eup %3221 }
0x2377   :  { %v2411_v32 = vadd.f32 1.0, %v3222_v30 }
0x2379   :  { %v2412_v1 = vmul.f32 %v2411_v32, %v2404_v2 }
0x237b   :  { %v2415_v33 = vsel %vm156_vm2, %v2412_v1, 0.0 }
0x237c   :  { %2416 = vadd.xlane.f32.xlu1 %v2415_v33 }
0x2409   :  { %v2417_v13 = vpop.xlane.xlu1 %2416 }
0x240a   :  { %v2418_v14 = vmul.f32 0.03125, %v2417_v13 }
0x240c   :  { %v2419_v34 = vsub.f32 %v2412_v1, %v2418_v14 }
0x240e   :  { %v2420_v35 = vmul.f32 %v2419_v34, %v2419_v34 }
0x2410   :  { %v2421_v36 = vsel %vm156_vm2, %v2420_v35, 0.0 }
0x2411   :  { %2422 = vadd.xlane.f32.xlu0 %v2421_v36 }
0x249e   :  { %v2423_v41 = vpop.xlane.xlu0 %2422 }
0x249f   :  { %v2424_v42 = vmul.f32 0.03125, %v2423_v41 }
0x24a1   :  { %v2425_v43 = vadd.f32 1e-12, %v2424_v42 }
0x24a3   :  { %3223 = vrsqrt.f32 %v2425_v43 }
0x24ad   :  { %v3224_v44 = vpop.eup %3223 }
0x24ae   :  { %v2427_v46 = vmul.f32 %v3224_v44, %v2419_v34 }
0x24b0   :  { %v2432_v47 = vmul.f32 %v2667_v45, %v2427_v46 }
0x24b2   :  { %v2437_v48 = vadd.f32 %v2668_v38, %v2432_v47 }
0x24b4   :  { %v2438_v39 = vpack.c.bf16 %v2437_v48, %v2437_v48 }
0x24b6   :  { %3033 = vmatmul.mubr.msk.bf16.vlgmr.msra.gmra.mrb[56].mxu0 %vm156_vm2, %v2438_v39 }
0x2589   :  { %v2497_v18 = vpop.f32.mrb[56].mxu0 }
0x258a   :  { %v2498_v49 = vadd.f32 %v2669_v0, %v2497_v18  ;;  %v3034_v50 = vpop.f32.mrb[57].mxu0 }
0x258b   :  { %v2500_v52 = vpop.f32.mrb[58].mxu0 }
0x258c   :  { %2503 = vmax.xlane.f32.xlu1 %v2498_v49  ;;  %v3035_v53 = vpop.f32.mrb[59].mxu0 }
0x2619   :  { %v2504_v25 = vpop.xlane.xlu1 %2503 }
0x261a   :  { %v2505_v29 = vsub.f32 %v2498_v49, %v2504_v25 }
0x261c   :  { %v2506_v54 = vmul.f32 1.442695, %v2505_v29 }
0x261e   :  { %3225 = vpow2.f32 %v2506_v54 }
0x2628   :  { %v3226_v55 = vpop.eup %3225 }
0x2629   :  { %2508 = vadd.xlane.f32.xlu1 %v3226_v55 }
0x26b6   :  { %v2509_v56 = vpop.xlane.xlu1 %2508 }
0x26b7   :  { %3227 = vlog2.f32 %v2509_v56 }
0x26c1   :  { %v3228_v57 = vpop.eup %3227 }
0x26c2   :  { %v2511_v58 = vmul.f32 0.6931472, %v3228_v57 }
0x26c4   :  { %v2512_v59 = vsub.f32 %v2505_v29, %v2511_v58 }
0x26c6   :  { %2513 = vst [vmem:[%s3845_s3] sm:$0xff] %v2512_v59 }

</bundles_post_ra>
